<compile_context>
chip_gen: v7x
topology: tpu7x:2x2x1
jax: 0.10.0
libtpu: 0.0.40
codegen_flags: <defaults>
</compile_context>

<pallas_src>
import functools

import jax
import jax.numpy as jnp
from jax import lax
from jax.experimental import pallas as pl
from jax.experimental.pallas import tpu as pltpu


def _fire_kernel(x_ref, wsq_ref, bsq_ref, wcomb_ref, bcomb_ref, out_ref,
                 pad_ref, im2col_ref, *, H, W, Cin, Csq, Ce):
    # ---- squeeze: 1x1 conv + ReLU (channels-last matmul on the MXU) --------
    xm = x_ref[0].reshape(H * W, Cin)                           # (H*W, Cin)
    s = jnp.dot(xm, wsq_ref[...], preferred_element_type=jnp.float32)
    s = jnp.maximum(s + bsq_ref[...], 0.0)                      # (H*W, Csq)

    # ---- zero only the 1-px halo ring; interior is overwritten below ------
    # (Done every step, not program_id-gated, so it is correct even when the
    #  parallel batch axis is sharded across TensorCores with per-core scratch.)
    pad_ref[0:1, :, :] = jnp.zeros((1, W + 2, Csq), jnp.float32)
    pad_ref[H + 1:H + 2, :, :] = jnp.zeros((1, W + 2, Csq), jnp.float32)
    pad_ref[1:H + 1, 0:1, :] = jnp.zeros((H, 1, Csq), jnp.float32)
    pad_ref[1:H + 1, W + 1:W + 2, :] = jnp.zeros((H, 1, Csq), jnp.float32)
    pad_ref[1:H + 1, 1:W + 1, :] = s.reshape(H, W, Csq)

    # ---- im2col: stack the 9 shifted 3x3 windows along the channel axis ---
    for t in range(9):
        kh, kw = divmod(t, 3)
        patch = pad_ref[kh:kh + H, kw:kw + W, :]                # (H, W, Csq)
        im2col_ref[:, t * Csq:(t + 1) * Csq] = patch.reshape(H * W, Csq)

    # ---- fused expand1x1 + expand3x3: ONE MXU matmul -----------------------
    # (Ce, 9*Csq) contracted with (H*W, 9*Csq) along their minor dims
    # (A @ B^T fast path) -> (Ce, H*W): result is already channels-first and
    # lane-dense, so it stores straight into the NCHW output slab.
    fused = lax.dot_general(
        wcomb_ref[...], im2col_ref[...],
        dimension_numbers=(((1,), (1,)), ((), ())),
        preferred_element_type=jnp.float32)
    fused = jnp.maximum(fused + bcomb_ref[...], 0.0)            # (Ce, H*W)
    out_ref[0] = fused.astype(out_ref.dtype)


def fire_pallas(x_nchw, params):
    """x_nchw: (N, Cin, H, W) float32.  Returns (N, Ce1+Ce3, H, W) float32."""
    w_sq, b_sq, w_e1, b_e1, w_e3, b_e3 = params
    N, Cin, H, W = x_nchw.shape
    Csq = w_sq.shape[0]
    Ce1 = w_e1.shape[0]
    Ce3 = w_e3.shape[0]
    Ce = Ce1 + Ce3

    # NCHW -> NHWC so channels sit on TPU lanes inside the kernel.
    # (Tiny: N*Cin*H*W; the output side needs no transpose at all.)
    x = jnp.transpose(x_nchw, (0, 2, 3, 1))

    # Squeeze weight as (Cin, Csq) for the channels-last matmul.
    wsq = jnp.transpose(w_sq[:, :, 0, 0], (1, 0))               # (Cin, Csq)
    bsq = b_sq.reshape(1, Csq)

    # Combined expand weight (Ce1+Ce3, 9*Csq): expand3x3 taps flattened
    # tap-major ((kh*3+kw)*Csq + j), expand1x1 folded into the centre tap.
    e3_block = jnp.transpose(w_e3, (0, 2, 3, 1)).reshape(Ce3, 9 * Csq)
    e1_block = jnp.zeros((Ce1, 9 * Csq), w_e1.dtype)
    e1_block = e1_block.at[:, 4 * Csq:5 * Csq].set(w_e1[:, :, 0, 0])
    w_comb = jnp.concatenate([e1_block, e3_block], axis=0)      # (Ce, 9*Csq)
    b_comb = jnp.concatenate([b_e1, b_e3]).reshape(Ce, 1)       # (Ce, 1)

    kernel = functools.partial(_fire_kernel, H=H, W=W, Cin=Cin, Csq=Csq, Ce=Ce)

    out_flat = pl.pallas_call(
        kernel,
        out_shape=jax.ShapeDtypeStruct((N, Ce, H * W), jnp.float32),
        grid_spec=pltpu.PrefetchScalarGridSpec(
            num_scalar_prefetch=0,
            grid=(N,),
            in_specs=[
                pl.BlockSpec((1, H, W, Cin), lambda n: (n, 0, 0, 0)),
                pl.BlockSpec((Cin, Csq), lambda n: (0, 0)),
                pl.BlockSpec((1, Csq), lambda n: (0, 0)),
                pl.BlockSpec((Ce, 9 * Csq), lambda n: (0, 0)),
                pl.BlockSpec((Ce, 1), lambda n: (0, 0)),
            ],
            out_specs=pl.BlockSpec((1, Ce, H * W), lambda n: (n, 0, 0)),
            scratch_shapes=[
                pltpu.VMEM((H + 2, W + 2, Csq), jnp.float32),   # padded squeeze
                pltpu.VMEM((H * W, 9 * Csq), jnp.float32),      # im2col block
            ],
        ),
        compiler_params=pltpu.CompilerParams(
            dimension_semantics=("parallel",),
            # Usage here is < 1 MiB; explicit limit is safe on v5e/v6e/v7x.
            vmem_limit_bytes=32 * 1024 * 1024),
    )(x, wsq, bsq, w_comb, b_comb)

    # Kernel already wrote channels-first with flattened spatial: free reshape.
    return out_flat.reshape(N, Ce, H, W)


def fire_reference(x_nchw, params):
    """Pure-JAX NCHW reference (mirrors the PyTorch Fire module)."""
    w_sq, b_sq, w_e1, b_e1, w_e3, b_e3 = params
    dn = lax.conv_dimension_numbers(x_nchw.shape, w_sq.shape,
                                    ("NCHW", "OIHW", "NCHW"))
    s = lax.conv_general_dilated(x_nchw, w_sq, (1, 1), "VALID",
                                 dimension_numbers=dn)
    s = jax.nn.relu(s + b_sq[None, :, None, None])
    e1 = lax.conv_general_dilated(s, w_e1, (1, 1), "VALID",
                                  dimension_numbers=dn)
    e1 = jax.nn.relu(e1 + b_e1[None, :, None, None])
    e3 = lax.conv_general_dilated(s, w_e3, (1, 1), ((1, 1), (1, 1)),
                                  dimension_numbers=dn)
    e3 = jax.nn.relu(e3 + b_e3[None, :, None, None])
    return jnp.concatenate([e1, e3], axis=1)


def init_params(key, inplanes, squeeze_planes, expand1x1_planes, expand3x3_planes):
    ks = jax.random.split(key, 6)
    scale = 0.1
    w_sq = scale * jax.random.normal(ks[0], (squeeze_planes, inplanes, 1, 1), jnp.float32)
    b_sq = scale * jax.random.normal(ks[1], (squeeze_planes,), jnp.float32)
    w_e1 = scale * jax.random.normal(ks[2], (expand1x1_planes, squeeze_planes, 1, 1), jnp.float32)
    b_e1 = scale * jax.random.normal(ks[3], (expand1x1_planes,), jnp.float32)
    w_e3 = scale * jax.random.normal(ks[4], (expand3x3_planes, squeeze_planes, 3, 3), jnp.float32)
    b_e3 = scale * jax.random.normal(ks[5], (expand3x3_planes,), jnp.float32)
    return (w_sq, b_sq, w_e1, b_e1, w_e3, b_e3)


if __name__ == "__main__":
    key = jax.random.PRNGKey(0)
    k_x, k_p = jax.random.split(key)

    N, Cin, H, W = 2, 4, 16, 16
    squeeze_planes, expand1x1_planes, expand3x3_planes = 8, 16, 16

    x = jax.random.normal(k_x, (N, Cin, H, W), jnp.float32)
    params = init_params(k_p, Cin, squeeze_planes, expand1x1_planes, expand3x3_planes)

    out = jax.block_until_ready(fire_pallas(x, params))
    ref = jax.block_until_ready(fire_reference(x, params))

    assert out.shape == (N, expand1x1_planes + expand3x3_planes, H, W), out.shape
    if not jnp.allclose(out, ref, atol=5e-4, rtol=5e-4):
        raise AssertionError("Pallas output does not match reference")
    print("KERNEL_OK")
</pallas_src>

<mosaic_0001>
module attributes {stable_mosaic.version = 11 : i64} {
  func.func @_fire_kernel(%arg0: i32, %arg1: memref<1x16x16x4xf32, #tpu.memory_space<vmem>>, %arg2: memref<4x8xf32, #tpu.memory_space<vmem>>, %arg3: memref<1x8xf32, #tpu.memory_space<vmem>>, %arg4: memref<32x72xf32, #tpu.memory_space<vmem>>, %arg5: memref<32x1xf32, #tpu.memory_space<vmem>>, %arg6: memref<1x32x256xf32, #tpu.memory_space<vmem>>, %arg7: memref<18x18x8xf32, #tpu.memory_space<vmem>>, %arg8: memref<256x72xf32, #tpu.memory_space<vmem>>) attributes {dimension_semantics = [#tpu.dimension_semantics<parallel>], iteration_bounds = array<i64: 2>, scalar_prefetch = 0 : i64, scratch_operands = 2 : i64, tpu.core_type = #tpu.core_type<tc>, window_params = [{transform_indices = @transform_0, window_bounds = array<i64: 1, 16, 16, 4>}, {pipeline_mode = #tpu.pipeline_mode<synchronous>, transform_indices = @transform_1, window_bounds = array<i64: 4, 8>}, {pipeline_mode = #tpu.pipeline_mode<synchronous>, transform_indices = @transform_2, window_bounds = array<i64: 1, 8>}, {pipeline_mode = #tpu.pipeline_mode<synchronous>, transform_indices = @transform_3, window_bounds = array<i64: 32, 72>}, {pipeline_mode = #tpu.pipeline_mode<synchronous>, transform_indices = @transform_4, window_bounds = array<i64: 32, 1>}, {transform_indices = @transform_5, window_bounds = array<i64: 1, 32, 256>}]} {
    %c0 = arith.constant 0 : index
    %c0_0 = arith.constant 0 : index
    %c0_1 = arith.constant 0 : index
    %c0_2 = arith.constant 0 : index
    %0 = vector.load %arg1[%c0, %c0_0, %c0_1, %c0_2] : memref<1x16x16x4xf32, #tpu.memory_space<vmem>>, vector<1x16x16x4xf32>
    %1 = vector.shape_cast %0 : vector<1x16x16x4xf32> to vector<16x16x4xf32>
    %2 = vector.shape_cast %1 : vector<16x16x4xf32> to vector<256x4xf32>
    %c0_3 = arith.constant 0 : index
    %c0_4 = arith.constant 0 : index
    %3 = vector.load %arg2[%c0_3, %c0_4] : memref<4x8xf32, #tpu.memory_space<vmem>>, vector<4x8xf32>
    %cst = arith.constant dense<0.000000e+00> : vector<256x8xf32>
    %4 = tpu.matmul %2, %3, %cst {dimension_numbers = #tpu.dot_dimension_numbers<[1], [0], [0], [1], [0, 0, 1, 1], [], []>} : vector<256x4xf32>, vector<4x8xf32>, vector<256x8xf32> -> vector<256x8xf32>
    %c0_5 = arith.constant 0 : index
    %c0_6 = arith.constant 0 : index
    %5 = vector.load %arg3[%c0_5, %c0_6] : memref<1x8xf32, #tpu.memory_space<vmem>>, vector<1x8xf32>
    %6 = vector.broadcast %5 : vector<1x8xf32> to vector<256x8xf32>
    %7 = arith.addf %4, %6 : vector<256x8xf32>
    %cst_7 = arith.constant 0.000000e+00 : f32
    %8 = vector.broadcast %cst_7 : f32 to vector<256x8xf32>
    %9 = arith.maximumf %7, %8 : vector<256x8xf32>
    %cst_8 = arith.constant 0.000000e+00 : f32
    %10 = vector.broadcast %cst_8 : f32 to vector<1x18x8xf32>
    %c0_9 = arith.constant 0 : index
    %c0_10 = arith.constant 0 : index
    %c0_11 = arith.constant 0 : index
    %11 = vector.load %arg7[%c0_9, %c0_10, %c0_11] : memref<18x18x8xf32, #tpu.memory_space<vmem>>, vector<1x18x8xf32>
    tpu.vector_store %arg7[%c0_9, %c0_10, %c0_11], %10 {strides = array<i32>} : memref<18x18x8xf32, #tpu.memory_space<vmem>>, vector<1x18x8xf32>,
    %cst_12 = arith.constant 0.000000e+00 : f32
    %12 = vector.broadcast %cst_12 : f32 to vector<1x18x8xf32>
    %c17 = arith.constant 17 : index
    %c0_13 = arith.constant 0 : index
    %c0_14 = arith.constant 0 : index
    %13 = vector.load %arg7[%c17, %c0_13, %c0_14] : memref<18x18x8xf32, #tpu.memory_space<vmem>>, vector<1x18x8xf32>
    tpu.vector_store %arg7[%c17, %c0_13, %c0_14], %12 {strides = array<i32>} : memref<18x18x8xf32, #tpu.memory_space<vmem>>, vector<1x18x8xf32>,
    %cst_15 = arith.constant 0.000000e+00 : f32
    %14 = vector.broadcast %cst_15 : f32 to vector<16x1x8xf32>
    %c1 = arith.constant 1 : index
    %c0_16 = arith.constant 0 : index
    %c0_17 = arith.constant 0 : index
    %15 = vector.load %arg7[%c1, %c0_16, %c0_17] : memref<18x18x8xf32, #tpu.memory_space<vmem>>, vector<16x1x8xf32>
    tpu.vector_store %arg7[%c1, %c0_16, %c0_17], %14 {strides = array<i32>} : memref<18x18x8xf32, #tpu.memory_space<vmem>>, vector<16x1x8xf32>,
    %cst_18 = arith.constant 0.000000e+00 : f32
    %16 = vector.broadcast %cst_18 : f32 to vector<16x1x8xf32>
    %c1_19 = arith.constant 1 : index
    %c17_20 = arith.constant 17 : index
    %c0_21 = arith.constant 0 : index
    %17 = vector.load %arg7[%c1_19, %c17_20, %c0_21] : memref<18x18x8xf32, #tpu.memory_space<vmem>>, vector<16x1x8xf32>
    tpu.vector_store %arg7[%c1_19, %c17_20, %c0_21], %16 {strides = array<i32>} : memref<18x18x8xf32, #tpu.memory_space<vmem>>, vector<16x1x8xf32>,
    %18 = vector.shape_cast %9 : vector<256x8xf32> to vector<16x16x8xf32>
    %c1_22 = arith.constant 1 : index
    %c1_23 = arith.constant 1 : index
    %c0_24 = arith.constant 0 : index
    %19 = vector.load %arg7[%c1_22, %c1_23, %c0_24] : memref<18x18x8xf32, #tpu.memory_space<vmem>>, vector<16x16x8xf32>
    tpu.vector_store %arg7[%c1_22, %c1_23, %c0_24], %18 {strides = array<i32>} : memref<18x18x8xf32, #tpu.memory_space<vmem>>, vector<16x16x8xf32>,
    %c0_25 = arith.constant 0 : index
    %c0_26 = arith.constant 0 : index
    %c0_27 = arith.constant 0 : index
    %20 = vector.load %arg7[%c0_25, %c0_26, %c0_27] : memref<18x18x8xf32, #tpu.memory_space<vmem>>, vector<16x16x8xf32>
    %21 = vector.shape_cast %20 : vector<16x16x8xf32> to vector<256x8xf32>
    %c0_28 = arith.constant 0 : index
    %c0_29 = arith.constant 0 : index
    %22 = vector.load %arg8[%c0_28, %c0_29] : memref<256x72xf32, #tpu.memory_space<vmem>>, vector<256x8xf32>
    tpu.vector_store %arg8[%c0_28, %c0_29], %21 {strides = array<i32>} : memref<256x72xf32, #tpu.memory_space<vmem>>, vector<256x8xf32>,
    %c0_30 = arith.constant 0 : index
    %c1_31 = arith.constant 1 : index
    %c0_32 = arith.constant 0 : index
    %23 = vector.load %arg7[%c0_30, %c1_31, %c0_32] : memref<18x18x8xf32, #tpu.memory_space<vmem>>, vector<16x16x8xf32>
    %24 = vector.shape_cast %23 : vector<16x16x8xf32> to vector<256x8xf32>
    %c0_33 = arith.constant 0 : index
    %c8 = arith.constant 8 : index
    %25 = vector.load %arg8[%c0_33, %c8] : memref<256x72xf32, #tpu.memory_space<vmem>>, vector<256x8xf32>
    tpu.vector_store %arg8[%c0_33, %c8], %24 {strides = array<i32>} : memref<256x72xf32, #tpu.memory_space<vmem>>, vector<256x8xf32>,
    %c0_34 = arith.constant 0 : index
    %c2 = arith.constant 2 : index
    %c0_35 = arith.constant 0 : index
    %26 = vector.load %arg7[%c0_34, %c2, %c0_35] : memref<18x18x8xf32, #tpu.memory_space<vmem>>, vector<16x16x8xf32>
    %27 = vector.shape_cast %26 : vector<16x16x8xf32> to vector<256x8xf32>
    %c0_36 = arith.constant 0 : index
    %c16 = arith.constant 16 : index
    %28 = vector.load %arg8[%c0_36, %c16] : memref<256x72xf32, #tpu.memory_space<vmem>>, vector<256x8xf32>
    tpu.vector_store %arg8[%c0_36, %c16], %27 {strides = array<i32>} : memref<256x72xf32, #tpu.memory_space<vmem>>, vector<256x8xf32>,
    %c1_37 = arith.constant 1 : index
    %c0_38 = arith.constant 0 : index
    %c0_39 = arith.constant 0 : index
    %29 = vector.load %arg7[%c1_37, %c0_38, %c0_39] : memref<18x18x8xf32, #tpu.memory_space<vmem>>, vector<16x16x8xf32>
    %30 = vector.shape_cast %29 : vector<16x16x8xf32> to vector<256x8xf32>
    %c0_40 = arith.constant 0 : index
    %c24 = arith.constant 24 : index
    %31 = vector.load %arg8[%c0_40, %c24] : memref<256x72xf32, #tpu.memory_space<vmem>>, vector<256x8xf32>
    tpu.vector_store %arg8[%c0_40, %c24], %30 {strides = array<i32>} : memref<256x72xf32, #tpu.memory_space<vmem>>, vector<256x8xf32>,
    %c1_41 = arith.constant 1 : index
    %c1_42 = arith.constant 1 : index
    %c0_43 = arith.constant 0 : index
    %32 = vector.load %arg7[%c1_41, %c1_42, %c0_43] : memref<18x18x8xf32, #tpu.memory_space<vmem>>, vector<16x16x8xf32>
    %33 = vector.shape_cast %32 : vector<16x16x8xf32> to vector<256x8xf32>
    %c0_44 = arith.constant 0 : index
    %c32 = arith.constant 32 : index
    %34 = vector.load %arg8[%c0_44, %c32] : memref<256x72xf32, #tpu.memory_space<vmem>>, vector<256x8xf32>
    tpu.vector_store %arg8[%c0_44, %c32], %33 {strides = array<i32>} : memref<256x72xf32, #tpu.memory_space<vmem>>, vector<256x8xf32>,
    %c1_45 = arith.constant 1 : index
    %c2_46 = arith.constant 2 : index
    %c0_47 = arith.constant 0 : index
    %35 = vector.load %arg7[%c1_45, %c2_46, %c0_47] : memref<18x18x8xf32, #tpu.memory_space<vmem>>, vector<16x16x8xf32>
    %36 = vector.shape_cast %35 : vector<16x16x8xf32> to vector<256x8xf32>
    %c0_48 = arith.constant 0 : index
    %c40 = arith.constant 40 : index
    %37 = vector.load %arg8[%c0_48, %c40] : memref<256x72xf32, #tpu.memory_space<vmem>>, vector<256x8xf32>
    tpu.vector_store %arg8[%c0_48, %c40], %36 {strides = array<i32>} : memref<256x72xf32, #tpu.memory_space<vmem>>, vector<256x8xf32>,
    %c2_49 = arith.constant 2 : index
    %c0_50 = arith.constant 0 : index
    %c0_51 = arith.constant 0 : index
    %38 = vector.load %arg7[%c2_49, %c0_50, %c0_51] : memref<18x18x8xf32, #tpu.memory_space<vmem>>, vector<16x16x8xf32>
    %39 = vector.shape_cast %38 : vector<16x16x8xf32> to vector<256x8xf32>
    %c0_52 = arith.constant 0 : index
    %c48 = arith.constant 48 : index
    %40 = vector.load %arg8[%c0_52, %c48] : memref<256x72xf32, #tpu.memory_space<vmem>>, vector<256x8xf32>
    tpu.vector_store %arg8[%c0_52, %c48], %39 {strides = array<i32>} : memref<256x72xf32, #tpu.memory_space<vmem>>, vector<256x8xf32>,
    %c2_53 = arith.constant 2 : index
    %c1_54 = arith.constant 1 : index
    %c0_55 = arith.constant 0 : index
    %41 = vector.load %arg7[%c2_53, %c1_54, %c0_55] : memref<18x18x8xf32, #tpu.memory_space<vmem>>, vector<16x16x8xf32>
    %42 = vector.shape_cast %41 : vector<16x16x8xf32> to vector<256x8xf32>
    %c0_56 = arith.constant 0 : index
    %c56 = arith.constant 56 : index
    %43 = vector.load %arg8[%c0_56, %c56] : memref<256x72xf32, #tpu.memory_space<vmem>>, vector<256x8xf32>
    tpu.vector_store %arg8[%c0_56, %c56], %42 {strides = array<i32>} : memref<256x72xf32, #tpu.memory_space<vmem>>, vector<256x8xf32>,
    %c2_57 = arith.constant 2 : index
    %c2_58 = arith.constant 2 : index
    %c0_59 = arith.constant 0 : index
    %44 = vector.load %arg7[%c2_57, %c2_58, %c0_59] : memref<18x18x8xf32, #tpu.memory_space<vmem>>, vector<16x16x8xf32>
    %45 = vector.shape_cast %44 : vector<16x16x8xf32> to vector<256x8xf32>
    %c0_60 = arith.constant 0 : index
    %c64 = arith.constant 64 : index
    %46 = vector.load %arg8[%c0_60, %c64] : memref<256x72xf32, #tpu.memory_space<vmem>>, vector<256x8xf32>
    tpu.vector_store %arg8[%c0_60, %c64], %45 {strides = array<i32>} : memref<256x72xf32, #tpu.memory_space<vmem>>, vector<256x8xf32>,
    %c0_61 = arith.constant 0 : index
    %c0_62 = arith.constant 0 : index
    %47 = vector.load %arg4[%c0_61, %c0_62] : memref<32x72xf32, #tpu.memory_space<vmem>>, vector<32x72xf32>
    %c0_63 = arith.constant 0 : index
    %c0_64 = arith.constant 0 : index
    %48 = vector.load %arg8[%c0_63, %c0_64] : memref<256x72xf32, #tpu.memory_space<vmem>>, vector<256x72xf32>
    %cst_65 = arith.constant dense<0.000000e+00> : vector<32x256xf32>
    %49 = tpu.matmul %47, %48, %cst_65 {dimension_numbers = #tpu.dot_dimension_numbers<[1], [1], [0], [0], [0, 0, 1, 0], [], []>} : vector<32x72xf32>, vector<256x72xf32>, vector<32x256xf32> -> vector<32x256xf32>
    %c0_66 = arith.constant 0 : index
    %c0_67 = arith.constant 0 : index
    %50 = vector.load %arg5[%c0_66, %c0_67] : memref<32x1xf32, #tpu.memory_space<vmem>>, vector<32x1xf32>
    %51 = vector.broadcast %50 : vector<32x1xf32> to vector<32x256xf32>
    %52 = arith.addf %49, %51 : vector<32x256xf32>
    %cst_68 = arith.constant 0.000000e+00 : f32
    %53 = vector.broadcast %cst_68 : f32 to vector<32x256xf32>
    %54 = arith.maximumf %52, %53 : vector<32x256xf32>
    %c0_69 = arith.constant 0 : index
    %c0_70 = arith.constant 0 : index
    %c0_71 = arith.constant 0 : index
    %55 = vector.load %arg6[%c0_69, %c0_70, %c0_71] : memref<1x32x256xf32, #tpu.memory_space<vmem>>, vector<1x32x256xf32>
    %56 = vector.shape_cast %55 : vector<1x32x256xf32> to vector<32x256xf32>
    %57 = vector.shape_cast %54 : vector<32x256xf32> to vector<1x32x256xf32>
    tpu.vector_store %arg6[%c0_69, %c0_70, %c0_71], %57 {strides = array<i32>} : memref<1x32x256xf32, #tpu.memory_space<vmem>>, vector<1x32x256xf32>,
    return
  }
  func.func @transform_0(%arg0: i32) -> (i32, i32, i32, i32) {
    %c0_i32 = arith.constant 0 : i32
    %c0_i32_0 = arith.constant 0 : i32
    %c0_i32_1 = arith.constant 0 : i32
    %c0_i32_2 = arith.constant 0 : i32
    return %arg0, %c0_i32, %c0_i32_0, %c0_i32_1 : i32, i32, i32, i32
  }
  func.func @transform_1(%arg0: i32) -> (i32, i32) {
    %c0_i32 = arith.constant 0 : i32
    %c0_i32_0 = arith.constant 0 : i32
    %c0_i32_1 = arith.constant 0 : i32
    return %c0_i32, %c0_i32_0 : i32, i32
  }
  func.func @transform_2(%arg0: i32) -> (i32, i32) {
    %c0_i32 = arith.constant 0 : i32
    %c0_i32_0 = arith.constant 0 : i32
    %c0_i32_1 = arith.constant 0 : i32
    return %c0_i32, %c0_i32_0 : i32, i32
  }
  func.func @transform_3(%arg0: i32) -> (i32, i32) {
    %c0_i32 = arith.constant 0 : i32
    %c0_i32_0 = arith.constant 0 : i32
    %c0_i32_1 = arith.constant 0 : i32
    return %c0_i32, %c0_i32_0 : i32, i32
  }
  func.func @transform_4(%arg0: i32) -> (i32, i32) {
    %c0_i32 = arith.constant 0 : i32
    %c0_i32_0 = arith.constant 0 : i32
    %c0_i32_1 = arith.constant 0 : i32
    return %c0_i32, %c0_i32_0 : i32, i32
  }
  func.func @transform_5(%arg0: i32) -> (i32, i32, i32) {
    %c0_i32 = arith.constant 0 : i32
    %c0_i32_0 = arith.constant 0 : i32
    %c0_i32_1 = arith.constant 0 : i32
    return %arg0, %c0_i32, %c0_i32_0 : i32, i32, i32
  }
}

</mosaic_0001>

<bundles_post_ra>
// kernel: tpu_custom_call.1
= control target key start
LH: loop header
LB: loop body
LE: loop exit
PB: predicated region body
PF: predicated region fallthrough
CT: control target
= control target key end

     0   :  { %10 = vsyncpa [#allocation5], 0  ;;  %s4234_s0 = inlined_call_operand.vmem [shape: f32[2,16,16,4], index: 0, kind: input, shape index: {}]   ;;  %s4235_s1 = inlined_call_operand.vmem [shape: f32[4,8], index: 1, kind: input, shape index: {}]   ;;  %s4236_s2 = inlined_call_operand.vmem [shape: f32[1,8], index: 2, kind: input, shape index: {}]   ;;  %s4237_s3 = inlined_call_operand.vmem [shape: f32[32,72], index: 3, kind: input, shape index: {}]   ;;  %s4238_s4 = inlined_call_operand.vmem [shape: f32[32,1], index: 4, kind: input, shape index: {}]   ;;  %s4239_s5 = inlined_call_operand.hbm [shape: f32[2,32,256], index: 5, kind: output, shape index: {}]  }
   0x1   :  { %12 = vsyncpa [#allocation5 + $0x1], 0  ;;  %s3085_s18 = smov 0   ;;  %s3087_s19 = smov 0  }
   0x2   :  { %s3089_s20 = smov 0   ;;  %s3091_s21 = smov 0  }
   0x3 LB: > { %s3106_s22 = sadd.s32 4294967295, %s3041_s21   ;;  %s2655_s23 = sadd.s32 4294967294, %s3041_s21   ;;  %s3041_s21 = sphi %s3091_s21, %s4247_s21   ;;  %s3037_s20 = sphi %s3089_s20, %s4246_s20   ;;  %s3033_s19 = sphi %s3087_s19, %s4245_s19   ;;  %s3029_s18 = sphi %s3085_s18, %s4244_s18  }
   0x4   : > { %s3110_s24 = sadd.s32 1, %s3041_s21   ;;  %s135_s25 = sadd.s32 1, %s3037_s20 }
   0x5   : > { %s132_s26 = ssub.s32 %s3041_s21, %s3110_s24  ;;  %p145_p0 = scmp.ne.s32.totalorder %s3037_s20, %s3033_s19 }
   0x6   : > { %p133_p1 = scmp.eq.s32.totalorder %s132_s26, 0  ;;  %p146_p2 = scmp.eq.s32.totalorder %s3106_s22, 1 }
   0x7   : > { %p151_p3 = scmp.ne.s32.totalorder %s3033_s19, %s3029_s18  ;;  %p152_p4 = scmp.eq.s32.totalorder %s2655_s23, 1 }
   0x8   : > { %s3121_s27 = scalar_select %p133_p1, %s3037_s20, %s135_s25  }
   0x9   : > { %p3123_p5 = por %p146_p2, %p145_p0  ;;  %p3127_p6 = por %p152_p4, %p151_p3 }
   0xa   : > { %p2658_p7 = scmp.ge.s32.totalorder %s3041_s21, 1  ;;  %p190_p8 = scmp.lt.s32.totalorder %s3041_s21, 3 }
   0xc   : > { %p191_p9 = pnand %p2658_p7, %p190_p8 }
   0xd   : > { %v255_v0 = vld [vmem:[%s4235_s1] sm:$0xf] (!%p191_p9)  ;;  %vm360_vm0 = vcmask (!%p191_p9), 1043456   ;;  %p218_p10 = scmp.lt.s32.totalorder (!%p191_p9), %s3106_s22, 1  ;;  %vm263_vm1 = vcmask (!%p191_p9), 31744   ;;  %vm621_vm2 = vcmask (!%p191_p9), 64512  }
   0xe   : > { %194 = sbr.rel (%p191_p9) target bundleno = 1128 (0x468), region = 40  ;;  %2812 = vmatprep.subr.msk.mxu0 (!%p191_p9), %vm360_vm0, %v255_v0  ;;  %v3043_v23 = vmov (!%p191_p9), 0.0   ;;  %vm624_vm3 = vcmask (!%p191_p9), 58368   ;;  %s3044_s12 = smov (!%p191_p9), 8   ;;  %vm631_vm4 = vcmask (!%p191_p9), 57344   ;;  %vm920_vm5 = vcmask (!%p191_p9), 130112  }
   0xf   : > { %2813 = vmatpush3.msk.msra.mxu0 (!%p191_p9), %vm360_vm0, %v255_v0  ;;  %622 = vst.msk [vmem:[#allocation2] sm:$0xff] (!%p191_p9), %vm621_vm2, %v3043_v23  ;;  %623 = vst.msk [vmem:[#allocation2 + $0x8] sm:$0xff] (!%p191_p9), %vm621_vm2, %v3043_v23  ;;  %s3045_s13 = smov (!%p191_p9), 16   ;;  %vm1113_vm6 = vcmask (!%p191_p9), 195712   ;;  %v3252_v42 = vld [vmem:[%s4236_s2] ss:$0 sm:$0xff] (!%p191_p9) }
  0x10   : > { %627 = vst.msk [vmem:[#allocation2 + $0x198] sm:$0xff] (!%p191_p9), %vm621_vm2, %v3043_v23  ;;  %628 = vst.msk [vmem:[#allocation2 + $0x1a0] sm:$0xff] (!%p191_p9), %vm621_vm2, %v3043_v23  ;;  %s3046_s16 = smov (!%p191_p9), 32   ;;  %s3047_s17 = smov (!%p191_p9), 40   ;;  %vm1306_vm7 = vcmask (!%p191_p9), 261312   ;;  %vm1499_vm8 = vcmask (!%p191_p9), 326912  }
  0x11   : > { %625 = vst.msk [vmem:[#allocation2 + $0x10] sm:$0x3] (!%p191_p9), %vm624_vm3, %v3043_v23  ;;  %629 = vst.msk [vmem:[#allocation2 + $0x1a8] sm:$0x3] (!%p191_p9), %vm624_vm3, %v3043_v23  ;;  %s3048_s23 = smov (!%p191_p9), 24   ;;  %s3049_s25 = smov (!%p191_p9), 56  }
  0x12   : > { %648 = vst.msk [vmem:[#allocation2 + $0x29] sm:$0x1] (!%p191_p9), %vm631_vm4, %v3043_v23  ;;  %632 = vst.msk [vmem:[#allocation2 + $0x18] sm:$0x1] (!%p191_p9), %vm631_vm4, %v3043_v23  ;;  %s3050_s26 = smov (!%p191_p9), 64   ;;  %s3051_s30 = smov (!%p191_p9), 48  }
  0x13   : > { %633 = vst.msk [vmem:[#allocation2 + $0x30] sm:$0x1] (!%p191_p9), %vm631_vm4, %v3043_v23  ;;  %634 = vst.msk [vmem:[#allocation2 + $0x48] sm:$0x1] (!%p191_p9), %vm631_vm4, %v3043_v23  ;;  %vm1692_vm9 = vcmask (!%p191_p9), 392512   ;;  %vm1886_vm10 = vcmask (!%p191_p9), 458112  }
  0x14   : > { %635 = vst.msk [vmem:[#allocation2 + $0x60] sm:$0x1] (!%p191_p9), %vm631_vm4, %v3043_v23  ;;  %636 = vst.msk [vmem:[#allocation2 + $0x78] sm:$0x1] (!%p191_p9), %vm631_vm4, %v3043_v23  ;;  %vm2079_vm11 = vcmask (!%p191_p9), 523712   ;;  %vm2272_vm12 = vcmask (!%p191_p9), 589312  }
  0x15   : > { %s219_s7 = scalar_select %p218_p10, %s3106_s22, 1  ;;  %637 = vst.msk [vmem:[#allocation2 + $0x90] sm:$0x1] %vm631_vm4, %v3043_v23  ;;  %638 = vst.msk [vmem:[#allocation2 + $0xa8] sm:$0x1] %vm631_vm4, %v3043_v23  ;;  %vm2365_vm13 = vcmask 588800  }
  0x16   : > { %v760_v24 = vld [vmem:[#allocation2 + $0x1] sm:$0xff]  ;;  %639 = vst.msk [vmem:[#allocation2 + $0xc0] sm:$0x1] %vm631_vm4, %v3043_v23  ;;  %640 = vst.msk [vmem:[#allocation2 + $0xd8] sm:$0x1] %vm631_vm4, %v3043_v23  ;;  %s215_s9 = sand.u32 1, %s3033_s19  }
  0x17   : > { %s2737_s8 = sshll.u32 %s219_s7, 8  ;;  %824 = vrot.lane.b32.xlu0 %v760_v24, %s3044_s12  ;;  %641 = vst.msk [vmem:[#allocation2 + $0xf0] sm:$0x1] %vm631_vm4, %v3043_v23  ;;  %642 = vst.msk [vmem:[#allocation2 + $0x108] sm:$0x1] %vm631_vm4, %v3043_v23  ;;  %v953_v27 = vld [vmem:[#allocation2 + $0x2] sm:$0xff] }
  0x18   : > { %s3141_s11 = scalar_lea.vmem %s4234_s0, %s2737_s8  ;;  %v761_v25 = vld [vmem:[#allocation2 + $0x9] sm:$0xff]  ;;  %643 = vst.msk [vmem:[#allocation2 + $0x120] sm:$0x1] %vm631_vm4, %v3043_v23  ;;  %644 = vst.msk [vmem:[#allocation2 + $0x138] sm:$0x1] %vm631_vm4, %v3043_v23  ;;  %v696_v36 = vld [vmem:[#allocation2] sm:$0xff] }
  0x19   : > { %v223_v1 = vld [vmem:[%s3141_s11] sm:$0xff]  ;;  %v224_v2 = vld [vmem:[%s3141_s11 + $0x8] sm:$0xff]  ;;  %v225_v3 = vld [vmem:[%s3141_s11 + $0x10] sm:$0xff]  ;;  %645 = vst.msk [vmem:[#allocation2 + $0x150] sm:$0x1] %vm631_vm4, %v3043_v23  ;;  %s2659_s10 = sshll.u32 %s215_s9, 6 }
  0x1a   : > { %2814 = vmatprep.mubr.msk.f32.mxu0 %vm263_vm1, %v223_v1  ;;  %v226_v4 = vld [vmem:[%s3141_s11 + $0x18] sm:$0xff]  ;;  %v227_v5 = vld [vmem:[%s3141_s11 + $0x20] sm:$0xff]  ;;  %v228_v6 = vld [vmem:[%s3141_s11 + $0x28] sm:$0xff]  ;;  %646 = vst.msk [vmem:[#allocation2 + $0x168] sm:$0x1] %vm631_vm4, %v3043_v23 }
  0x1b   : > { %2815 = vmatmul.mubr.msk.f32.vlgmr.msra.gmra.mrb[0].mxu0 %vm263_vm1, %v224_v2  ;;  %v229_v7 = vld [vmem:[%s3141_s11 + $0x30] sm:$0xff]  ;;  %v230_v8 = vld [vmem:[%s3141_s11 + $0x38] sm:$0xff]  ;;  %v231_v9 = vld [vmem:[%s3141_s11 + $0x40] sm:$0xff]  ;;  %826 = vrot.lane.b32.xlu0 %v761_v25, %s3044_s12  ;;  %647 = vst.msk [vmem:[#allocation2 + $0x180] sm:$0x1] %vm631_vm4, %v3043_v23 }
  0x1c   : > { %2817 = vmatprep.mubr.msk.f32.mxu0 %vm263_vm1, %v225_v3  ;;  %v232_v10 = vld [vmem:[%s3141_s11 + $0x48] sm:$0xff]  ;;  %v233_v11 = vld [vmem:[%s3141_s11 + $0x50] sm:$0xff]  ;;  %v234_v12 = vld [vmem:[%s3141_s11 + $0x58] sm:$0xff]  ;;  %649 = vst.msk [vmem:[#allocation2 + $0x41] sm:$0x1] %vm631_vm4, %v3043_v23 }
  0x1d   : > { %v235_v13 = vld [vmem:[%s3141_s11 + $0x60] sm:$0xff]  ;;  %v236_v14 = vld [vmem:[%s3141_s11 + $0x68] sm:$0xff]  ;;  %v237_v15 = vld [vmem:[%s3141_s11 + $0x70] sm:$0xff]  ;;  %650 = vst.msk [vmem:[#allocation2 + $0x59] sm:$0x1] %vm631_vm4, %v3043_v23 }
  0x1e   : > { %v238_v16 = vld [vmem:[%s3141_s11 + $0x78] sm:$0xff]  ;;  %v239_v17 = vld [vmem:[%s3141_s11 + $0x80] sm:$0xff]  ;;  %v240_v18 = vld [vmem:[%s3141_s11 + $0x88] sm:$0xff]  ;;  %651 = vst.msk [vmem:[#allocation2 + $0x71] sm:$0x1] %vm631_vm4, %v3043_v23 }
  0x1f   : > { %2818 = vmatmul.mubr.msk.f32.gmra.mrb[2].mxu0 %vm263_vm1, %v226_v4  ;;  %v241_v19 = vld [vmem:[%s3141_s11 + $0x90] sm:$0xff]  ;;  %v242_v20 = vld [vmem:[%s3141_s11 + $0x98] sm:$0xff]  ;;  %v243_v21 = vld [vmem:[%s3141_s11 + $0xa0] sm:$0xff]  ;;  %652 = vst.msk [vmem:[#allocation2 + $0x89] sm:$0x1] %vm631_vm4, %v3043_v23  ;;  %1017 = vrot.lane.b32.xlu0 %v953_v27, %s3045_s13 }
  0x20   : > { %2820 = vmatprep.mubr.msk.f32.mxu0 %vm263_vm1, %v227_v5  ;;  %v244_v22 = vld [vmem:[%s3141_s11 + $0xa8] sm:$0xff]  ;;  %653 = vst.msk [vmem:[#allocation2 + $0xa1] sm:$0x1] %vm631_vm4, %v3043_v23  ;;  %654 = vst.msk [vmem:[#allocation2 + $0xb9] sm:$0x1] %vm631_vm4, %v3043_v23  ;;  %v245_v28 = vld [vmem:[%s3141_s11 + $0xb0] sm:$0xff] }
  0x21   : > { %655 = vst.msk [vmem:[#allocation2 + $0xd1] sm:$0x1] %vm631_vm4, %v3043_v23  ;;  %656 = vst.msk [vmem:[#allocation2 + $0xe9] sm:$0x1] %vm631_vm4, %v3043_v23  ;;  %v954_v26 = vld [vmem:[#allocation2 + $0xa] sm:$0xff]  ;;  %v246_v29 = vld [vmem:[%s3141_s11 + $0xb8] sm:$0xff] }
  0x22   : > { %657 = vst.msk [vmem:[#allocation2 + $0x101] sm:$0x1] %vm631_vm4, %v3043_v23  ;;  %658 = vst.msk [vmem:[#allocation2 + $0x119] sm:$0x1] %vm631_vm4, %v3043_v23  ;;  %1019 = vrot.lane.b32.xlu1 %v954_v26, %s3045_s13  ;;  %v247_v30 = vld [vmem:[%s3141_s11 + $0xc0] sm:$0xff]  ;;  %v248_v31 = vld [vmem:[%s3141_s11 + $0xc8] sm:$0xff] }
  0x23   : > { %2821 = vmatmul.mubr.msk.f32.gmra.mrb[4].mxu0 %vm263_vm1, %v228_v6  ;;  %659 = vst.msk [vmem:[#allocation2 + $0x131] sm:$0x1] %vm631_vm4, %v3043_v23  ;;  %660 = vst.msk [vmem:[#allocation2 + $0x149] sm:$0x1] %vm631_vm4, %v3043_v23  ;;  %v249_v32 = vld [vmem:[%s3141_s11 + $0xd0] sm:$0xff]  ;;  %v250_v33 = vld [vmem:[%s3141_s11 + $0xd8] sm:$0xff] }
  0x24   : > { %2823 = vmatprep.mubr.msk.f32.mxu0 %vm263_vm1, %v229_v7  ;;  %661 = vst.msk [vmem:[#allocation2 + $0x161] sm:$0x1] %vm631_vm4, %v3043_v23  ;;  %662 = vst.msk [vmem:[#allocation2 + $0x179] sm:$0x1] %vm631_vm4, %v3043_v23  ;;  %v251_v34 = vld [vmem:[%s3141_s11 + $0xe0] sm:$0xff]  ;;  %v252_v35 = vld [vmem:[%s3141_s11 + $0xe8] sm:$0xff] }
  0x25   : > { %663 = vst.msk [vmem:[#allocation2 + $0x191] sm:$0x1] %vm631_vm4, %v3043_v23  ;;  %v697_v38 = vld [vmem:[#allocation2 + $0x8] sm:$0xff]  ;;  %vm3808_vm14 = vmpackc.low %vm2365_vm13, %vm2365_vm13 }
  0x26   : > { %728 = vst.msk [vmem:[#allocation3] sm:$0xff] %vm621_vm2, %v696_v36  ;;  %729 = vst.msk [vmem:[#allocation3 + $0x8] sm:$0xff] %vm621_vm2, %v697_v38 }
  0x27   : > { %2824 = vmatmul.mubr.msk.f32.gmra.mrb[6].mxu0 %vm263_vm1, %v230_v8 }
  0x28   : > { %2826 = vmatprep.mubr.msk.f32.mxu0 %vm263_vm1, %v231_v9 }
  0x2b   : > { %2827 = vmatmul.mubr.msk.f32.gmra.mrb[8].mxu0 %vm263_vm1, %v232_v10 }
  0x2c   : > { %2829 = vmatprep.mubr.msk.f32.mxu0 %vm263_vm1, %v233_v11 }
  0x2f   : > { %2830 = vmatmul.mubr.msk.f32.gmra.mrb[10].mxu0 %vm263_vm1, %v234_v12 }
  0x30   : > { %2832 = vmatprep.mubr.msk.f32.mxu0 %vm263_vm1, %v235_v13 }
  0x33   : > { %2833 = vmatmul.mubr.msk.f32.gmra.mrb[12].mxu0 %vm263_vm1, %v236_v14 }
  0x34   : > { %2835 = vmatprep.mubr.msk.f32.mxu0 %vm263_vm1, %v237_v15 }
  0x37   : > { %2836 = vmatmul.mubr.msk.f32.gmra.mrb[14].mxu0 %vm263_vm1, %v238_v16 }
  0x38   : > { %2838 = vmatprep.mubr.msk.f32.mxu0 %vm263_vm1, %v239_v17 }
  0x3b   : > { %2839 = vmatmul.mubr.msk.f32.gmra.mrb[16].mxu0 %vm263_vm1, %v240_v18 }
  0x3c   : > { %2841 = vmatprep.mubr.msk.f32.mxu0 %vm263_vm1, %v241_v19 }
  0x3f   : > { %2842 = vmatmul.mubr.msk.f32.gmra.mrb[18].mxu0 %vm263_vm1, %v242_v20 }
  0x40   : > { %2844 = vmatprep.mubr.msk.f32.mxu0 %vm263_vm1, %v243_v21 }
  0x43   : > { %2845 = vmatmul.mubr.msk.f32.gmra.mrb[20].mxu0 %vm263_vm1, %v244_v22 }
  0x44   : > { %2847 = vmatprep.mubr.msk.f32.mxu0 %vm263_vm1, %v245_v28 }
  0x47   : > { %2848 = vmatmul.mubr.msk.f32.gmra.mrb[22].mxu0 %vm263_vm1, %v246_v29 }
  0x48   : > { %2850 = vmatprep.mubr.msk.f32.mxu0 %vm263_vm1, %v247_v30 }
  0x4b   : > { %2851 = vmatmul.mubr.msk.f32.gmra.mrb[24].mxu0 %vm263_vm1, %v248_v31 }
  0x4c   : > { %2853 = vmatprep.mubr.msk.f32.mxu0 %vm263_vm1, %v249_v32 }
  0x4f   : > { %2854 = vmatmul.mubr.msk.f32.gmra.mrb[26].mxu0 %vm263_vm1, %v250_v33 }
  0x50   : > { %2856 = vmatprep.mubr.msk.f32.mxu0 %vm263_vm1, %v251_v34 }
  0x53   : > { %2857 = vmatmul.mubr.msk.f32.gmra.mrb[28].mxu0 %vm263_vm1, %v252_v35 }
  0x89   : > { %v825_v37 = vpop.permute.xlu0 %824 }
  0x8a   : > { %921 = vst.msk [vmem:[#allocation3] sm:$0xff] %vm920_vm5, %v825_v37 }
  0x8d   : > { %v827_v39 = vpop.permute.xlu0 %826 }
  0x8e   : > { %922 = vst.msk [vmem:[#allocation3 + $0x8] sm:$0xff] %vm920_vm5, %v827_v39 }
  0x91   : > { %v1018_v41 = vpop.permute.xlu0 %1017 }
  0x92   : > { %1114 = vst.msk [vmem:[#allocation3] sm:$0xff] %vm1113_vm6, %v1018_v41 }
  0x94   : > { %v1020_v40 = vpop.permute.xlu1 %1019 }
  0x95   : > { %1115 = vst.msk [vmem:[#allocation3 + $0x8] sm:$0xff] %vm1113_vm6, %v1020_v40 }
  0xee   : > { %v2816_v43 = vpop.f32.mrb[0].mxu0 }
  0xef   : > { %v436_v44 = vadd.f32 %v2816_v43, %v3252_v42  ;;  %v430_v45 = vpop.f32.mrb[1].mxu0 }
  0xf0   : > { %v431_v46 = vadd.f32 %v3252_v42, %v430_v45 }
  0xf1   : > { %v590_v47 = vmax.f32 %v436_v44, 0.0 }
  0xf2   : > { %v589_v48 = vmax.f32 %v431_v46, 0.0  ;;  %v2819_v49 = vpop.f32.mrb[2].mxu0 }
  0xf3   : > { %665 = vst.msk [vmem:[#allocation2 + $0x21] sm:$0xff] %vm621_vm2, %v590_v47  ;;  %v446_v50 = vadd.f32 %v2819_v49, %v3252_v42  ;;  %v440_v51 = vpop.f32.mrb[3].mxu0 }
  0xf4   : > { %664 = vst.msk [vmem:[#allocation2 + $0x19] sm:$0xff] %vm621_vm2, %v589_v48  ;;  %v441_v52 = vadd.f32 %v3252_v42, %v440_v51 }
  0xf5   : > { %v592_v53 = vmax.f32 %v446_v50, 0.0 }
  0xf6   : > { %v591_v54 = vmax.f32 %v441_v52, 0.0  ;;  %v2822_v55 = vpop.f32.mrb[4].mxu0 }
  0xf7   : > { %667 = vst.msk [vmem:[#allocation2 + $0x39] sm:$0xff] %vm621_vm2, %v592_v53  ;;  %v456_v56 = vadd.f32 %v2822_v55, %v3252_v42  ;;  %v450_v57 = vpop.f32.mrb[5].mxu0 }
  0xf8   : > { %666 = vst.msk [vmem:[#allocation2 + $0x31] sm:$0xff] %vm621_vm2, %v591_v54  ;;  %v451_v58 = vadd.f32 %v3252_v42, %v450_v57 }
  0xf9   : > { %v594_v59 = vmax.f32 %v456_v56, 0.0 }
  0xfa   : > { %v1340_v60 = vld [vmem:[#allocation2 + $0x21] sm:$0xff]  ;;  %v593_v61 = vmax.f32 %v451_v58, 0.0  ;;  %v2825_v62 = vpop.f32.mrb[6].mxu0 }
  0xfb   : > { %1405 = vrot.lane.b32.xlu0 %v1340_v60, %s3046_s16  ;;  %830 = vrot.lane.b32.xlu1 %v1340_v60, %s3044_s12  ;;  %v1146_v63 = vld [vmem:[#allocation2 + $0x18] sm:$0xff]  ;;  %669 = vst.msk [vmem:[#allocation2 + $0x51] sm:$0xff] %vm621_vm2, %v594_v59  ;;  %v466_v0 = vadd.f32 %v2825_v62, %v3252_v42  ;;  %v460_v1 = vpop.f32.mrb[7].mxu0  ;;  %v1147_v2 = vld [vmem:[#allocation2 + $0x20] sm:$0xff] }
  0xfc   : > { %668 = vst.msk [vmem:[#allocation2 + $0x49] sm:$0xff] %vm621_vm2, %v593_v61  ;;  %v461_v3 = vadd.f32 %v3252_v42, %v460_v1  ;;  %730 = vst.msk [vmem:[#allocation3 + $0x10] sm:$0xff] %vm621_vm2, %v1146_v63  ;;  %v1533_v5 = vld [vmem:[#allocation2 + $0x22] sm:$0xff]  ;;  %v955_v14 = vld [vmem:[#allocation2 + $0x1a] sm:$0xff] }
  0xfd   : > { %v596_v4 = vmax.f32 %v466_v0, 0.0  ;;  %731 = vst.msk [vmem:[#allocation3 + $0x18] sm:$0xff] %vm621_vm2, %v1147_v2  ;;  %v762_v15 = vld [vmem:[#allocation2 + $0x19] sm:$0xff] }
  0xfe   : > { %v595_v6 = vmax.f32 %v461_v3, 0.0  ;;  %v2828_v7 = vpop.f32.mrb[8].mxu0  ;;  %v1920_v29 = vld [vmem:[#allocation2 + $0x39] sm:$0xff] }
  0xff   : > { %1598 = vrot.lane.b32.xlu0 %v1533_v5, %s3047_s17  ;;  %1023 = vrot.lane.b32.xlu1 %v1533_v5, %s3045_s13  ;;  %v3274_v8 = vld [vmem:[#allocation2 + $0x30] sm:$0xff]  ;;  %671 = vst.msk [vmem:[#allocation2 + $0x69] sm:$0xff] %vm621_vm2, %v596_v4  ;;  %v476_v9 = vadd.f32 %v2828_v7, %v3252_v42  ;;  %v470_v10 = vpop.f32.mrb[9].mxu0  ;;  %v3278_v11 = vld [vmem:[#allocation2 + $0x38] sm:$0xff] }
 0x100   : > { %670 = vst.msk [vmem:[#allocation2 + $0x61] sm:$0xff] %vm621_vm2, %v595_v6  ;;  %v471_v12 = vadd.f32 %v3252_v42, %v470_v10  ;;  %732 = vst.msk [vmem:[#allocation3 + $0x20] sm:$0xff] %vm621_vm2, %v3274_v8  ;;  %v2113_v38 = vld [vmem:[#allocation2 + $0x3a] sm:$0xff]  ;;  %v764_v48 = vld [vmem:[#allocation2 + $0x31] sm:$0xff] }
 0x101   : > { %v598_v13 = vmax.f32 %v476_v9, 0.0  ;;  %733 = vst.msk [vmem:[#allocation3 + $0x28] sm:$0xff] %vm621_vm2, %v3278_v11  ;;  %v957_v55 = vld [vmem:[#allocation2 + $0x32] sm:$0xff] }
 0x102   : > { %v597_v16 = vmax.f32 %v471_v12, 0.0  ;;  %v2831_v17 = vpop.f32.mrb[10].mxu0  ;;  %v767_v6 = vld [vmem:[#allocation2 + $0x51] sm:$0xff] }
 0x103   : > { %1021 = vrot.lane.b32.xlu0 %v955_v14, %s3045_s13  ;;  %828 = vrot.lane.b32.xlu1 %v762_v15, %s3044_s12  ;;  %v3288_v18 = vld [vmem:[#allocation2 + $0x48] sm:$0xff]  ;;  %673 = vst.msk [vmem:[#allocation2 + $0x81] sm:$0xff] %vm621_vm2, %v598_v13  ;;  %v486_v19 = vadd.f32 %v2831_v17, %v3252_v42  ;;  %v480_v20 = vpop.f32.mrb[11].mxu0  ;;  %v3292_v21 = vld [vmem:[#allocation2 + $0x50] sm:$0xff] }
 0x104   : > { %672 = vst.msk [vmem:[#allocation2 + $0x79] sm:$0xff] %vm621_vm2, %v597_v16  ;;  %v481_v22 = vadd.f32 %v3252_v42, %v480_v20  ;;  %734 = vst.msk [vmem:[#allocation3 + $0x30] sm:$0xff] %vm621_vm2, %v3288_v18  ;;  %v959_v3 = vld [vmem:[#allocation2 + $0x4a] sm:$0xff]  ;;  %v960_v7 = vld [vmem:[#allocation2 + $0x52] sm:$0xff] }
 0x105   : > { %v600_v23 = vmax.f32 %v486_v19, 0.0  ;;  %735 = vst.msk [vmem:[#allocation3 + $0x38] sm:$0xff] %vm621_vm2, %v3292_v21  ;;  %v254_v16 = vld [vmem:[%s3141_s11 + $0xf8] sm:$0xff] }
 0x106   : > { %v599_v24 = vmax.f32 %v481_v22, 0.0  ;;  %v2834_v25 = vpop.f32.mrb[12].mxu0  ;;  %v769_v20 = vld [vmem:[#allocation2 + $0x69] sm:$0xff] }
 0x107   : > { %1210 = vrot.lane.b32.xlu0 %v1146_v63, %s3048_s23  ;;  %1212 = vrot.lane.b32.xlu1 %v1147_v2, %s3048_s23  ;;  %v3302_v26 = vld [vmem:[#allocation2 + $0x60] sm:$0xff]  ;;  %675 = vst.msk [vmem:[#allocation2 + $0x99] sm:$0xff] %vm621_vm2, %v600_v23  ;;  %v496_v27 = vadd.f32 %v2834_v25, %v3252_v42  ;;  %v490_v28 = vpop.f32.mrb[13].mxu0  ;;  %v3307_v30 = vld [vmem:[#allocation2 + $0x68] sm:$0xff] }
 0x108   : > { %674 = vst.msk [vmem:[#allocation2 + $0x91] sm:$0xff] %vm621_vm2, %v599_v24  ;;  %v491_v31 = vadd.f32 %v3252_v42, %v490_v28  ;;  %736 = vst.msk [vmem:[#allocation3 + $0x40] sm:$0xff] %vm621_vm2, %v3302_v26  ;;  %v766_v2 = vld [vmem:[#allocation2 + $0x49] sm:$0xff] }
 0x109   : > { %v602_v32 = vmax.f32 %v496_v27, 0.0  ;;  %737 = vst.msk [vmem:[#allocation3 + $0x48] sm:$0xff] %vm621_vm2, %v3307_v30  ;;  %v961_v17 = vld [vmem:[#allocation2 + $0x62] sm:$0xff]  ;;  %v962_v22 = vld [vmem:[#allocation2 + $0x6a] sm:$0xff] }
 0x10a   : > { %v601_v33 = vmax.f32 %v491_v31, 0.0  ;;  %v2837_v34 = vpop.f32.mrb[14].mxu0  ;;  %v771_v31 = vld [vmem:[#allocation2 + $0x81] sm:$0xff] }
 0x10b   : > { %1985 = vrot.lane.b32.xlu0 %v1920_v29, %s3049_s25  ;;  %1403 = vrot.lane.b32.xlu1 %v762_v15, %s3046_s16  ;;  %v3316_v35 = vld [vmem:[#allocation2 + $0x78] sm:$0xff]  ;;  %677 = vst.msk [vmem:[#allocation2 + $0xb1] sm:$0xff] %vm621_vm2, %v602_v32  ;;  %v506_v36 = vadd.f32 %v2837_v34, %v3252_v42  ;;  %v500_v37 = vpop.f32.mrb[15].mxu0  ;;  %v3321_v39 = vld [vmem:[#allocation2 + $0x80] sm:$0xff] }
 0x10c   : > { %676 = vst.msk [vmem:[#allocation2 + $0xa9] sm:$0xff] %vm621_vm2, %v601_v33  ;;  %v501_v40 = vadd.f32 %v3252_v42, %v500_v37  ;;  %738 = vst.msk [vmem:[#allocation3 + $0x50] sm:$0xff] %vm621_vm2, %v3316_v35  ;;  %v768_v15 = vld [vmem:[#allocation2 + $0x61] sm:$0xff] }
 0x10d   : > { %v604_v41 = vmax.f32 %v506_v36, 0.0  ;;  %739 = vst.msk [vmem:[#allocation3 + $0x58] sm:$0xff] %vm621_vm2, %v3321_v39 }
 0x10e   : > { %v603_v43 = vmax.f32 %v501_v40, 0.0  ;;  %v2840_v44 = vpop.f32.mrb[16].mxu0 }
 0x10f   : > { %2178 = vrot.lane.b32.xlu0 %v2113_v38, %s3050_s26  ;;  %1596 = vrot.lane.b32.xlu1 %v955_v14, %s3047_s17  ;;  %v3330_v45 = vld [vmem:[#allocation2 + $0x90] sm:$0xff]  ;;  %679 = vst.msk [vmem:[#allocation2 + $0xc9] sm:$0xff] %vm621_vm2, %v604_v41  ;;  %v516_v46 = vadd.f32 %v2840_v44, %v3252_v42  ;;  %v510_v47 = vpop.f32.mrb[17].mxu0  ;;  %v3335_v49 = vld [vmem:[#allocation2 + $0x98] sm:$0xff] }
 0x110   : > { %678 = vst.msk [vmem:[#allocation2 + $0xc1] sm:$0xff] %vm621_vm2, %v603_v43  ;;  %v511_v50 = vadd.f32 %v3252_v42, %v510_v47  ;;  %740 = vst.msk [vmem:[#allocation3 + $0x60] sm:$0xff] %vm621_vm2, %v3330_v45  ;;  %v253_v14 = vld [vmem:[%s3141_s11 + $0xf0] sm:$0xff]  ;;  %s217_s11 = scalar_lea.vmem [#allocation4], %s2659_s10 }
 0x111   : > { %v606_v51 = vmax.f32 %v516_v46, 0.0  ;;  %741 = vst.msk [vmem:[#allocation3 + $0x68] sm:$0xff] %vm621_vm2, %v3335_v49  ;;  %2859 = vmatprep.mubr.msk.f32.mxu0 %vm263_vm1, %v253_v14  ;;  %v772_v32 = vld [vmem:[#allocation2 + $0x91] sm:$0xff]  ;;  %s2593_s14 = sshll.u32 %s217_s11, 4  ;;  %s4188_s14 = int_to_ptr.vmem [resolvable:$true] %s2593_s14 }
 0x112   : > { %v605_v52 = vmax.f32 %v511_v50, 0.0  ;;  %v2843_v58 = vpop.f32.mrb[18].mxu0  ;;  %2860 = vmatmul.mubr.msk.f32.gmra.mrb[30].mxu0 %vm263_vm1, %v254_v16  ;;  %v965_v46 = vld [vmem:[#allocation2 + $0x92] sm:$0xff] }
 0x113   : > { %832 = vrot.lane.b32.xlu0 %v764_v48, %s3044_s12  ;;  %834 = vrot.lane.b32.xlu1 %v1920_v29, %s3044_s12  ;;  %v3344_v53 = vld [vmem:[#allocation2 + $0xa8] sm:$0xff]  ;;  %681 = vst.msk [vmem:[#allocation2 + $0xe1] sm:$0xff] %vm621_vm2, %v606_v51  ;;  %v3347_v54 = vld [vmem:[#allocation2 + $0xb0] sm:$0xff]  ;;  %v526_v59 = vadd.f32 %v2843_v58, %v3252_v42  ;;  %v520_v63 = vpop.f32.mrb[19].mxu0  ;;  %v773_v51 = vld [vmem:[#allocation2 + $0x99] sm:$0xff] }
 0x114   : > { %680 = vst.msk [vmem:[#allocation2 + $0xd9] sm:$0xff] %vm621_vm2, %v605_v52  ;;  %742 = vst.msk [vmem:[#allocation3 + $0x70] sm:$0xff] %vm621_vm2, %v3344_v53  ;;  %v521_v0 = vadd.f32 %v3252_v42, %v520_v63 }
 0x115   : > { %743 = vst.msk [vmem:[#allocation3 + $0x78] sm:$0xff] %vm621_vm2, %v3347_v54  ;;  %v608_v62 = vmax.f32 %v526_v59, 0.0 }
 0x116   : > { %v607_v1 = vmax.f32 %v521_v0, 0.0 }
 0x117   : > { %1025 = vrot.lane.b32.xlu0 %v957_v55, %s3045_s13  ;;  %1027 = vrot.lane.b32.xlu1 %v2113_v38, %s3045_s13  ;;  %v3356_v56 = vld [vmem:[#allocation2 + $0xc0] sm:$0xff]  ;;  %v3358_v57 = vld [vmem:[#allocation2 + $0xc8] sm:$0xff]  ;;  %683 = vst.msk [vmem:[#allocation2 + $0xf9] sm:$0xff] %vm621_vm2, %v608_v62 }
 0x118   : > { %744 = vst.msk [vmem:[#allocation3 + $0x80] sm:$0xff] %vm621_vm2, %v3356_v56  ;;  %745 = vst.msk [vmem:[#allocation3 + $0x88] sm:$0xff] %vm621_vm2, %v3358_v57 }
 0x119   : > { %682 = vst.msk [vmem:[#allocation2 + $0xf1] sm:$0xff] %vm621_vm2, %v607_v1  ;;  %v774_v1 = vld [vmem:[#allocation2 + $0xa9] sm:$0xff] }
 0x11b   : > { %1214 = vrot.lane.b32.xlu0 %v3274_v8, %s3048_s23  ;;  %1409 = vrot.lane.b32.xlu1 %v1920_v29, %s3046_s16  ;;  %v3368_v60 = vld [vmem:[#allocation2 + $0xd8] sm:$0xff]  ;;  %v3370_v61 = vld [vmem:[#allocation2 + $0xe0] sm:$0xff] }
 0x11c   : > { %746 = vst.msk [vmem:[#allocation3 + $0x90] sm:$0xff] %vm621_vm2, %v3368_v60  ;;  %747 = vst.msk [vmem:[#allocation3 + $0x98] sm:$0xff] %vm621_vm2, %v3370_v61  ;;  %v963_v29 = vld [vmem:[#allocation2 + $0x7a] sm:$0xff] }
 0x11f   : > { %1792 = vrot.lane.b32.xlu0 %v3278_v11, %s3051_s30  ;;  %1602 = vrot.lane.b32.xlu1 %v2113_v38, %s3047_s17  ;;  %v964_v38 = vld [vmem:[#allocation2 + $0x82] sm:$0xff] }
 0x120   : > { %v3392_v4 = vld [vmem:[#allocation2 + $0xf0] sm:$0xff]  ;;  %v3394_v5 = vld [vmem:[#allocation2 + $0xf8] sm:$0xff] }
 0x121   : > { %748 = vst.msk [vmem:[#allocation3 + $0xa0] sm:$0xff] %vm621_vm2, %v3392_v4  ;;  %749 = vst.msk [vmem:[#allocation3 + $0xa8] sm:$0xff] %vm621_vm2, %v3394_v5 }
 0x123   : > { %1407 = vrot.lane.b32.xlu0 %v764_v48, %s3046_s16  ;;  %1216 = vrot.lane.b32.xlu1 %v3278_v11, %s3048_s23 }
 0x127   : > { %1600 = vrot.lane.b32.xlu0 %v957_v55, %s3047_s17  ;;  %1790 = vrot.lane.b32.xlu1 %v3274_v8, %s3051_s30  ;;  %v2846_v8 = vpop.f32.mrb[20].mxu0 }
 0x128   : > { %v536_v9 = vadd.f32 %v2846_v8, %v3252_v42  ;;  %v530_v11 = vpop.f32.mrb[21].mxu0 }
 0x129   : > { %v531_v12 = vadd.f32 %v3252_v42, %v530_v11 }
 0x12a   : > { %v610_v10 = vmax.f32 %v536_v9, 0.0 }
 0x12b   : > { %836 = vrot.lane.b32.xlu0 %v766_v2, %s3044_s12  ;;  %1983 = vrot.lane.b32.xlu1 %v764_v48, %s3049_s25  ;;  %v609_v13 = vmax.f32 %v531_v12, 0.0 }
 0x12c   : > { %685 = vst.msk [vmem:[#allocation2 + $0x111] sm:$0xff] %vm621_vm2, %v610_v10 }
 0x12d   : > { %684 = vst.msk [vmem:[#allocation2 + $0x109] sm:$0xff] %vm621_vm2, %v609_v13 }
 0x12f   : > { %1029 = vrot.lane.b32.xlu0 %v959_v3, %s3045_s13  ;;  %2176 = vrot.lane.b32.xlu1 %v957_v55, %s3050_s26 }
 0x133   : > { %1218 = vrot.lane.b32.xlu0 %v3288_v18, %s3048_s23  ;;  %838 = vrot.lane.b32.xlu1 %v767_v6, %s3044_s12 }
 0x134   : > { %v3430_v19 = vld [vmem:[#allocation2 + $0x110] sm:$0xff] }
 0x135   : > { %751 = vst.msk [vmem:[#allocation3 + $0xb8] sm:$0xff] %vm621_vm2, %v3430_v19 }
 0x137   : > { %1794 = vrot.lane.b32.xlu0 %v3288_v18, %s3051_s30  ;;  %1031 = vrot.lane.b32.xlu1 %v960_v7, %s3045_s13  ;;  %v3425_v18 = vld [vmem:[#allocation2 + $0x108] sm:$0xff] }
 0x138   : > { %750 = vst.msk [vmem:[#allocation3 + $0xb0] sm:$0xff] %vm621_vm2, %v3425_v18 }
 0x13b   : > { %1987 = vrot.lane.b32.xlu0 %v766_v2, %s3049_s25  ;;  %1989 = vrot.lane.b32.xlu1 %v767_v6, %s3049_s25 }
 0x13f   : > { %2180 = vrot.lane.b32.xlu0 %v959_v3, %s3050_s26  ;;  %2182 = vrot.lane.b32.xlu1 %v960_v7, %s3050_s26 }
 0x143   : > { %1411 = vrot.lane.b32.xlu0 %v766_v2, %s3046_s16  ;;  %1413 = vrot.lane.b32.xlu1 %v767_v6, %s3046_s16 }
 0x147   : > { %1604 = vrot.lane.b32.xlu0 %v959_v3, %s3047_s17  ;;  %1606 = vrot.lane.b32.xlu1 %v960_v7, %s3047_s17  ;;  %v966_v7 = vld [vmem:[#allocation2 + $0x9a] sm:$0xff] }
 0x14b   : > { %840 = vrot.lane.b32.xlu0 %v768_v15, %s3044_s12  ;;  %1220 = vrot.lane.b32.xlu1 %v3292_v21, %s3048_s23 }
 0x14f   : > { %1033 = vrot.lane.b32.xlu0 %v961_v17, %s3045_s13  ;;  %1796 = vrot.lane.b32.xlu1 %v3292_v21, %s3051_s30  ;;  %v2849_v21 = vpop.f32.mrb[22].mxu0 }
 0x150   : > { %v546_v23 = vadd.f32 %v2849_v21, %v3252_v42  ;;  %v540_v25 = vpop.f32.mrb[23].mxu0 }
 0x151   : > { %v541_v27 = vadd.f32 %v3252_v42, %v540_v25  ;;  %v2852_v33 = vpop.f32.mrb[24].mxu0 }
 0x152   : > { %v612_v24 = vmax.f32 %v546_v23, 0.0  ;;  %v556_v37 = vadd.f32 %v2852_v33, %v3252_v42  ;;  %v550_v40 = vpop.f32.mrb[25].mxu0 }
 0x153   : > { %1222 = vrot.lane.b32.xlu0 %v3302_v26, %s3048_s23  ;;  %842 = vrot.lane.b32.xlu1 %v769_v20, %s3044_s12  ;;  %v611_v28 = vmax.f32 %v541_v27, 0.0  ;;  %v551_v43 = vadd.f32 %v3252_v42, %v550_v40  ;;  %v2855_v52 = vpop.f32.mrb[26].mxu0 }
 0x154   : > { %687 = vst.msk [vmem:[#allocation2 + $0x129] sm:$0xff] %vm621_vm2, %v612_v24  ;;  %v566_v59 = vadd.f32 %v2855_v52, %v3252_v42  ;;  %v560_v62 = vpop.f32.mrb[27].mxu0  ;;  %v969_v24 = vld [vmem:[#allocation2 + $0xc2] sm:$0xff] }
 0x155   : > { %686 = vst.msk [vmem:[#allocation2 + $0x121] sm:$0xff] %vm621_vm2, %v611_v28  ;;  %v613_v50 = vmax.f32 %v551_v43, 0.0  ;;  %v561_v0 = vadd.f32 %v3252_v42, %v560_v62  ;;  %v2858_v8 = vpop.f32.mrb[28].mxu0  ;;  %v778_v43 = vld [vmem:[#allocation2 + $0xd9] sm:$0xff] }
 0x156   : > { %v616_v63 = vmax.f32 %v566_v59, 0.0  ;;  %v576_v11 = vadd.f32 %v2858_v8, %v3252_v42  ;;  %v570_v12 = vpop.f32.mrb[29].mxu0  ;;  %v2129_v62 = vld [vmem:[#allocation2 + $0xfa] sm:$0xff] }
 0x157   : > { %1798 = vrot.lane.b32.xlu0 %v3302_v26, %s3051_s30  ;;  %1035 = vrot.lane.b32.xlu1 %v962_v22, %s3045_s13  ;;  %v770_v26 = vld [vmem:[#allocation2 + $0x79] sm:$0xff]  ;;  %688 = vst.msk [vmem:[#allocation2 + $0x139] sm:$0xff] %vm621_vm2, %v613_v50  ;;  %v615_v6 = vmax.f32 %v561_v0, 0.0  ;;  %v571_v14 = vadd.f32 %v3252_v42, %v570_v12  ;;  %v776_v42 = vld [vmem:[#allocation2 + $0xc1] sm:$0xff] }
 0x158   : > { %691 = vst.msk [vmem:[#allocation2 + $0x159] sm:$0xff] %vm621_vm2, %v616_v63  ;;  %v618_v13 = vmax.f32 %v576_v11, 0.0 }
 0x159   : > { %690 = vst.msk [vmem:[#allocation2 + $0x151] sm:$0xff] %vm621_vm2, %v615_v6  ;;  %v973_v6 = vld [vmem:[#allocation2 + $0xf2] sm:$0xff] }
 0x15a   : > { %693 = vst.msk [vmem:[#allocation2 + $0x171] sm:$0xff] %vm621_vm2, %v618_v13 }
 0x15b   : > { %1991 = vrot.lane.b32.xlu0 %v768_v15, %s3049_s25  ;;  %1993 = vrot.lane.b32.xlu1 %v769_v20, %s3049_s25  ;;  %v775_v15 = vld [vmem:[#allocation2 + $0xb1] sm:$0xff]  ;;  %v617_v20 = vmax.f32 %v571_v14, 0.0  ;;  %v782_v14 = vld [vmem:[#allocation2 + $0x109] sm:$0xff] }
 0x15c   : > { %v3461_v41 = vld [vmem:[#allocation2 + $0x120] sm:$0xff]  ;;  %v3466_v44 = vld [vmem:[#allocation2 + $0x128] sm:$0xff] }
 0x15d   : > { %752 = vst.msk [vmem:[#allocation3 + $0xc0] sm:$0xff] %vm621_vm2, %v3461_v41  ;;  %753 = vst.msk [vmem:[#allocation3 + $0xc8] sm:$0xff] %vm621_vm2, %v3466_v44 }
 0x15e   : > { %692 = vst.msk [vmem:[#allocation2 + $0x169] sm:$0xff] %vm621_vm2, %v617_v20 }
 0x15f   : > { %2184 = vrot.lane.b32.xlu0 %v961_v17, %s3050_s26  ;;  %2186 = vrot.lane.b32.xlu1 %v962_v22, %s3050_s26  ;;  %v3505_v22 = vld [vmem:[#allocation2 + $0x138] sm:$0xff] }
 0x160   : > { %754 = vst.msk [vmem:[#allocation3 + $0xd0] sm:$0xff] %vm621_vm2, %v3505_v22  ;;  %v3522_v28 = vld [vmem:[#allocation2 + $0x150] sm:$0xff] }
 0x161   : > { %756 = vst.msk [vmem:[#allocation3 + $0xe0] sm:$0xff] %vm621_vm2, %v3522_v28 }
 0x163   : > { %844 = vrot.lane.b32.xlu0 %v770_v26, %s3044_s12  ;;  %1224 = vrot.lane.b32.xlu1 %v3307_v30, %s3048_s23  ;;  %v3524_v26 = vld [vmem:[#allocation2 + $0x158] sm:$0xff] }
 0x164   : > { %757 = vst.msk [vmem:[#allocation3 + $0xe8] sm:$0xff] %vm621_vm2, %v3524_v26 }
 0x167   : > { %1037 = vrot.lane.b32.xlu0 %v963_v29, %s3045_s13  ;;  %1800 = vrot.lane.b32.xlu1 %v3307_v30, %s3051_s30  ;;  %v614_v30 = vmax.f32 %v556_v37, 0.0  ;;  %v777_v29 = vld [vmem:[#allocation2 + $0xc9] sm:$0xff] }
 0x168   : > { %v3535_v37 = vld [vmem:[#allocation2 + $0x168] sm:$0xff] }
 0x169   : > { %689 = vst.msk [vmem:[#allocation2 + $0x141] sm:$0xff] %vm621_vm2, %v614_v30  ;;  %758 = vst.msk [vmem:[#allocation3 + $0xf0] sm:$0xff] %vm621_vm2, %v3535_v37 }
 0x16b   : > { %1226 = vrot.lane.b32.xlu0 %v3316_v35, %s3048_s23  ;;  %846 = vrot.lane.b32.xlu1 %v771_v31, %s3044_s12 }
 0x16d   : > { %v1406_v34 = vpop.permute.xlu0 %1405  ;;  %v831_v36 = vpop.permute.xlu1 %830 }
 0x16e   : > { %924 = vst.msk [vmem:[#allocation3 + $0x18] sm:$0xff] %vm920_vm5, %v831_v36  ;;  %v970_v36 = vld [vmem:[#allocation2 + $0xca] sm:$0xff] }
 0x16f   : > { %848 = vrot.lane.b32.xlu0 %v772_v32, %s3044_s12  ;;  %1039 = vrot.lane.b32.xlu1 %v964_v38, %s3045_s13  ;;  %v1549_v38 = vld [vmem:[#allocation2 + $0xe2] sm:$0xff] }
 0x171   : > { %v1599_v47 = vpop.permute.xlu0 %1598  ;;  %v1024_v48 = vpop.permute.xlu1 %1023 }
 0x172   : > { %1117 = vst.msk [vmem:[#allocation3 + $0x18] sm:$0xff] %vm1113_vm6, %v1024_v48 }
 0x173   : > { %1041 = vrot.lane.b32.xlu0 %v965_v46, %s3045_s13  ;;  %1228 = vrot.lane.b32.xlu1 %v3321_v39, %s3048_s23 }
 0x175   : > { %v1022_v55 = vpop.permute.xlu0 %1021  ;;  %v829_v58 = vpop.permute.xlu1 %828 }
 0x176   : > { %923 = vst.msk [vmem:[#allocation3 + $0x10] sm:$0xff] %vm920_vm5, %v829_v58 }
 0x177   : > { %1116 = vst.msk [vmem:[#allocation3 + $0x10] sm:$0xff] %vm1113_vm6, %v1022_v55  ;;  %1230 = vrot.lane.b32.xlu0 %v3330_v45, %s3048_s23  ;;  %850 = vrot.lane.b32.xlu1 %v773_v51, %s3044_s12  ;;  %v967_v45 = vld [vmem:[#allocation2 + $0xaa] sm:$0xff]  ;;  %v1936_v55 = vld [vmem:[#allocation2 + $0xf9] sm:$0xff] }
 0x179   : > { %v1211_v2 = vpop.permute.xlu0 %1210  ;;  %v1213_v3 = vpop.permute.xlu1 %1212 }
 0x17a   : > { %1307 = vst.msk [vmem:[#allocation3] sm:$0xff] %vm1306_vm7, %v1211_v2  ;;  %1308 = vst.msk [vmem:[#allocation3 + $0x8] sm:$0xff] %vm1306_vm7, %v1213_v3 }
 0x17b   : > { %1501 = vst.msk [vmem:[#allocation3 + $0x8] sm:$0xff] %vm1499_vm8, %v1406_v34  ;;  %852 = vrot.lane.b32.xlu0 %v774_v1, %s3044_s12  ;;  %1043 = vrot.lane.b32.xlu1 %v966_v7, %s3045_s13 }
 0x17c   : > { %1694 = vst.msk [vmem:[#allocation3 + $0x8] sm:$0xff] %vm1692_vm9, %v1599_v47 }
 0x17d   : > { %v1986_v9 = vpop.permute.xlu0 %1985  ;;  %v1404_v10 = vpop.permute.xlu1 %1403 }
 0x17e   : > { %1500 = vst.msk [vmem:[#allocation3] sm:$0xff] %vm1499_vm8, %v1404_v10 }
 0x17f   : > { %1045 = vrot.lane.b32.xlu0 %v967_v45, %s3045_s13  ;;  %1232 = vrot.lane.b32.xlu1 %v3335_v49, %s3048_s23  ;;  %v3507_v49 = vld [vmem:[#allocation2 + $0x140] sm:$0xff] }
 0x180   : > { %755 = vst.msk [vmem:[#allocation3 + $0xd8] sm:$0xff] %vm621_vm2, %v3507_v49 }
 0x181   : > { %v2179_v16 = vpop.permute.xlu0 %2178  ;;  %v1597_v17 = vpop.permute.xlu1 %1596 }
 0x182   : > { %1693 = vst.msk [vmem:[#allocation3] sm:$0xff] %vm1692_vm9, %v1597_v17 }
 0x183   : > { %1234 = vrot.lane.b32.xlu0 %v3344_v53, %s3048_s23  ;;  %854 = vrot.lane.b32.xlu1 %v775_v15, %s3044_s12  ;;  %v968_v53 = vld [vmem:[#allocation2 + $0xb2] sm:$0xff] }
 0x185   : > { %v833_v21 = vpop.permute.xlu0 %832  ;;  %v835_v23 = vpop.permute.xlu1 %834 }
 0x186   : > { %925 = vst.msk [vmem:[#allocation3 + $0x20] sm:$0xff] %vm920_vm5, %v833_v21  ;;  %926 = vst.msk [vmem:[#allocation3 + $0x28] sm:$0xff] %vm920_vm5, %v835_v23 }
 0x187   : > { %856 = vrot.lane.b32.xlu0 %v776_v42, %s3044_s12  ;;  %1047 = vrot.lane.b32.xlu1 %v968_v53, %s3045_s13  ;;  %v783_v42 = vld [vmem:[#allocation2 + $0x111] sm:$0xff] }
 0x189   : > { %v1026_v25 = vpop.permute.xlu0 %1025  ;;  %v1028_v27 = vpop.permute.xlu1 %1027 }
 0x18a   : > { %1118 = vst.msk [vmem:[#allocation3 + $0x20] sm:$0xff] %vm1113_vm6, %v1026_v25  ;;  %1119 = vst.msk [vmem:[#allocation3 + $0x28] sm:$0xff] %vm1113_vm6, %v1028_v27  ;;  %v976_v25 = vld [vmem:[#allocation2 + $0x112] sm:$0xff] }
 0x18b   : > { %1049 = vrot.lane.b32.xlu0 %v969_v24, %s3045_s13  ;;  %1236 = vrot.lane.b32.xlu1 %v3347_v54, %s3048_s23  ;;  %v1356_v54 = vld [vmem:[#allocation2 + $0xe1] sm:$0xff] }
 0x18d   : > { %v1215_v31 = vpop.permute.xlu0 %1214  ;;  %v1410_v32 = vpop.permute.xlu1 %1409 }
 0x18e   : > { %1309 = vst.msk [vmem:[#allocation3 + $0x10] sm:$0xff] %vm1306_vm7, %v1215_v31 }
 0x18f   : > { %1238 = vrot.lane.b32.xlu0 %v3356_v56, %s3048_s23  ;;  %858 = vrot.lane.b32.xlu1 %v777_v29, %s3044_s12  ;;  %v3542_v56 = vld [vmem:[#allocation2 + $0x170] sm:$0xff] }
 0x190   : > { %759 = vst.msk [vmem:[#allocation3 + $0xf8] sm:$0xff] %vm621_vm2, %v3542_v56 }
 0x191   : > { %v1793_v33 = vpop.permute.xlu0 %1792  ;;  %v1603_v34 = vpop.permute.xlu1 %1602 }
 0x192   : > { %1888 = vst.msk [vmem:[#allocation3 + $0x8] sm:$0xff] %vm1886_vm10, %v1793_v33 }
 0x193   : > { %2081 = vst.msk [vmem:[#allocation3 + $0x8] sm:$0xff] %vm2079_vm11, %v1986_v9  ;;  %1437 = vrot.lane.b32.xlu0 %v1356_v54, %s3046_s16  ;;  %1051 = vrot.lane.b32.xlu1 %v970_v36, %s3045_s13 }
 0x194   : > { %2274 = vst.msk [vmem:[#allocation3 + $0x8] sm:$0xff] %vm2272_vm12, %v2179_v16 }
 0x195   : > { %v1408_v40 = vpop.permute.xlu0 %1407  ;;  %v1217_v30 = vpop.permute.xlu1 %1216 }
 0x196   : > { %1502 = vst.msk [vmem:[#allocation3 + $0x10] sm:$0xff] %vm1499_vm8, %v1408_v40  ;;  %v3646_v40 = vld [vmem:[#allocation2 + $0x122] sm:$0xff] }
 0x197   : > { %1310 = vst.msk [vmem:[#allocation3 + $0x18] sm:$0xff] %vm1306_vm7, %v1217_v30  ;;  %1630 = vrot.lane.b32.xlu0 %v1549_v38, %s3047_s17  ;;  %1240 = vrot.lane.b32.xlu1 %v3358_v57, %s3048_s23  ;;  %v971_v57 = vld [vmem:[#allocation2 + $0xda] sm:$0xff] }
 0x198   : > { %1503 = vst.msk [vmem:[#allocation3 + $0x18] sm:$0xff] %vm1499_vm8, %v1410_v32 }
 0x199   : > { %1696 = vst.msk [vmem:[#allocation3 + $0x18] sm:$0xff] %vm1692_vm9, %v1603_v34  ;;  %v1601_v46 = vpop.permute.xlu0 %1600  ;;  %v1791_v47 = vpop.permute.xlu1 %1790 }
 0x19a   : > { %1695 = vst.msk [vmem:[#allocation3 + $0x10] sm:$0xff] %vm1692_vm9, %v1601_v46  ;;  %v3654_v46 = vld [vmem:[#allocation2 + $0x129] sm:$0xff] }
 0x19b   : > { %1887 = vst.msk [vmem:[#allocation3] sm:$0xff] %vm1886_vm10, %v1791_v47  ;;  %860 = vrot.lane.b32.xlu0 %v778_v43, %s3044_s12  ;;  %862 = vrot.lane.b32.xlu1 %v1356_v54, %s3044_s12 }
 0x19d   : > { %v837_v48 = vpop.permute.xlu0 %836  ;;  %v1984_v50 = vpop.permute.xlu1 %1983 }
 0x19e   : > { %927 = vst.msk [vmem:[#allocation3 + $0x30] sm:$0xff] %vm920_vm5, %v837_v48 }
 0x19f   : > { %2080 = vst.msk [vmem:[#allocation3] sm:$0xff] %vm2079_vm11, %v1984_v50  ;;  %1053 = vrot.lane.b32.xlu0 %v971_v57, %s3045_s13  ;;  %1055 = vrot.lane.b32.xlu1 %v1549_v38, %s3045_s13 }
 0x1a1   : > { %v1030_v51 = vpop.permute.xlu0 %1029  ;;  %v2177_v52 = vpop.permute.xlu1 %2176 }
 0x1a2   : > { %1120 = vst.msk [vmem:[#allocation3 + $0x30] sm:$0xff] %vm1113_vm6, %v1030_v51 }
 0x1a3   : > { %2273 = vst.msk [vmem:[#allocation3] sm:$0xff] %vm2272_vm12, %v2177_v52  ;;  %1242 = vrot.lane.b32.xlu0 %v3368_v60, %s3048_s23  ;;  %1244 = vrot.lane.b32.xlu1 %v3370_v61, %s3048_s23  ;;  %v780_v60 = vld [vmem:[#allocation2 + $0xf1] sm:$0xff] }
 0x1a5   : > { %v1219_v58 = vpop.permute.xlu0 %1218  ;;  %v839_v59 = vpop.permute.xlu1 %838 }
 0x1a6   : > { %1311 = vst.msk [vmem:[#allocation3 + $0x20] sm:$0xff] %vm1306_vm7, %v1219_v58 }
 0x1a7   : > { %928 = vst.msk [vmem:[#allocation3 + $0x38] sm:$0xff] %vm920_vm5, %v839_v59  ;;  %2017 = vrot.lane.b32.xlu0 %v1936_v55, %s3049_s25  ;;  %1435 = vrot.lane.b32.xlu1 %v778_v43, %s3046_s16 }
 0x1a9   : > { %v1795_v63 = vpop.permute.xlu0 %1794  ;;  %v1032_v0 = vpop.permute.xlu1 %1031 }
 0x1aa   : > { %1889 = vst.msk [vmem:[#allocation3 + $0x10] sm:$0xff] %vm1886_vm10, %v1795_v63 }
 0x1ab   : > { %1121 = vst.msk [vmem:[#allocation3 + $0x38] sm:$0xff] %vm1113_vm6, %v1032_v0  ;;  %2210 = vrot.lane.b32.xlu0 %v2129_v62, %s3050_s26  ;;  %1628 = vrot.lane.b32.xlu1 %v971_v57, %s3047_s17 }
 0x1ad   : > { %v1988_v61 = vpop.permute.xlu0 %1987  ;;  %v1990_v1 = vpop.permute.xlu1 %1989 }
 0x1ae   : > { %2082 = vst.msk [vmem:[#allocation3 + $0x10] sm:$0xff] %vm2079_vm11, %v1988_v61  ;;  %v3694_v61 = vld [vmem:[#allocation2 + $0x141] sm:$0xff] }
 0x1af   : > { %864 = vrot.lane.b32.xlu0 %v780_v60, %s3044_s12  ;;  %866 = vrot.lane.b32.xlu1 %v1936_v55, %s3044_s12 }
 0x1b1   : > { %v2181_v2 = vpop.permute.xlu0 %2180  ;;  %v2183_v3 = vpop.permute.xlu1 %2182 }
 0x1b2   : > { %2275 = vst.msk [vmem:[#allocation3 + $0x10] sm:$0xff] %vm2272_vm12, %v2181_v2 }
 0x1b3   : > { %1057 = vrot.lane.b32.xlu0 %v973_v6, %s3045_s13  ;;  %1059 = vrot.lane.b32.xlu1 %v2129_v62, %s3045_s13 }
 0x1b5   : > { %v1412_v7 = vpop.permute.xlu0 %1411  ;;  %v1414_v45 = vpop.permute.xlu1 %1413 }
 0x1b6   : > { %1504 = vst.msk [vmem:[#allocation3 + $0x20] sm:$0xff] %vm1499_vm8, %v1412_v7 }
 0x1b7   : > { %1246 = vrot.lane.b32.xlu0 %v3392_v4, %s3048_s23  ;;  %1441 = vrot.lane.b32.xlu1 %v1936_v55, %s3046_s16  ;;  %v3676_v55 = vld [vmem:[#allocation2 + $0x139] sm:$0xff] }
 0x1b9   : > { %v1605_v8 = vpop.permute.xlu0 %1604  ;;  %v1607_v9 = vpop.permute.xlu1 %1606 }
 0x1ba   : > { %1697 = vst.msk [vmem:[#allocation3 + $0x20] sm:$0xff] %vm1692_vm9, %v1605_v8  ;;  %v3711_v8 = vld [vmem:[#allocation2 + $0x169] sm:$0xff] }
 0x1bb   : > { %1824 = vrot.lane.b32.xlu0 %v3394_v5, %s3051_s30  ;;  %1634 = vrot.lane.b32.xlu1 %v2129_v62, %s3047_s17  ;;  %v3684_v62 = vld [vmem:[#allocation2 + $0x13a] sm:$0xff] }
 0x1bd   : > { %v841_v10 = vpop.permute.xlu0 %840  ;;  %v1221_v11 = vpop.permute.xlu1 %1220 }
 0x1be   : > { %929 = vst.msk [vmem:[#allocation3 + $0x40] sm:$0xff] %vm920_vm5, %v841_v10 }
 0x1bf   : > { %1312 = vst.msk [vmem:[#allocation3 + $0x28] sm:$0xff] %vm1306_vm7, %v1221_v11  ;;  %1439 = vrot.lane.b32.xlu0 %v780_v60, %s3046_s16  ;;  %1822 = vrot.lane.b32.xlu1 %v3392_v4, %s3051_s30  ;;  %v975_v4 = vld [vmem:[#allocation2 + $0x10a] sm:$0xff] }
 0x1c0   : > { %1505 = vst.msk [vmem:[#allocation3 + $0x28] sm:$0xff] %vm1499_vm8, %v1414_v45  ;;  %v3705_v45 = vld [vmem:[#allocation2 + $0x142] sm:$0xff] }
 0x1c1   : > { %1698 = vst.msk [vmem:[#allocation3 + $0x28] sm:$0xff] %vm1692_vm9, %v1607_v9  ;;  %v1034_v12 = vpop.permute.xlu0 %1033  ;;  %v1797_v13 = vpop.permute.xlu1 %1796  ;;  %v3713_v9 = vld [vmem:[#allocation2 + $0x159] sm:$0xff] }
 0x1c2   : > { %1122 = vst.msk [vmem:[#allocation3 + $0x40] sm:$0xff] %vm1113_vm6, %v1034_v12  ;;  %v3720_v12 = vld [vmem:[#allocation2 + $0x16a] sm:$0xff] }
 0x1c3   : > { %1890 = vst.msk [vmem:[#allocation3 + $0x18] sm:$0xff] %vm1886_vm10, %v1797_v13  ;;  %1632 = vrot.lane.b32.xlu0 %v973_v6, %s3047_s17  ;;  %2015 = vrot.lane.b32.xlu1 %v780_v60, %s3049_s25  ;;  %v3692_v60 = vld [vmem:[#allocation2 + $0x151] sm:$0xff] }
 0x1c4   : > { %2083 = vst.msk [vmem:[#allocation3 + $0x18] sm:$0xff] %vm2079_vm11, %v1990_v1 }
 0x1c5   : > { %2276 = vst.msk [vmem:[#allocation3 + $0x18] sm:$0xff] %vm2272_vm12, %v2183_v3  ;;  %v1223_v15 = vpop.permute.xlu0 %1222  ;;  %v843_v16 = vpop.permute.xlu1 %842  ;;  %v3702_v3 = vld [vmem:[#allocation2 + $0x152] sm:$0xff] }
 0x1c6   : > { %1313 = vst.msk [vmem:[#allocation3 + $0x30] sm:$0xff] %vm1306_vm7, %v1223_v15  ;;  %v3724_v15 = vld [vmem:[#allocation2 + $0x15a] sm:$0xff] }
 0x1c7   : > { %930 = vst.msk [vmem:[#allocation3 + $0x48] sm:$0xff] %vm920_vm5, %v843_v16  ;;  %868 = vrot.lane.b32.xlu0 %v782_v14, %s3044_s12  ;;  %2208 = vrot.lane.b32.xlu1 %v973_v6, %s3050_s26  ;;  %v3730_v16 = vld [vmem:[#allocation2 + $0x171] sm:$0xff] }
 0x1c9   : > { %v1799_v17 = vpop.permute.xlu0 %1798  ;;  %v1036_v20 = vpop.permute.xlu1 %1035 }
 0x1ca   : > { %1891 = vst.msk [vmem:[#allocation3 + $0x20] sm:$0xff] %vm1886_vm10, %v1799_v17 }
 0x1cb   : > { %1123 = vst.msk [vmem:[#allocation3 + $0x48] sm:$0xff] %vm1113_vm6, %v1036_v20  ;;  %1061 = vrot.lane.b32.xlu0 %v975_v4, %s3045_s13  ;;  %1248 = vrot.lane.b32.xlu1 %v3394_v5, %s3048_s23 }
 0x1cd   : > { %v1992_v21 = vpop.permute.xlu0 %1991  ;;  %v1994_v23 = vpop.permute.xlu1 %1993 }
 0x1ce   : > { %2084 = vst.msk [vmem:[#allocation3 + $0x20] sm:$0xff] %vm2079_vm11, %v1992_v21  ;;  %v3740_v21 = vld [vmem:[#allocation2 + $0x172] sm:$0xff] }
 0x1cf   : > { %1826 = vrot.lane.b32.xlu0 %v3425_v18, %s3051_s30  ;;  %870 = vrot.lane.b32.xlu1 %v783_v42, %s3044_s12 }
 0x1d1   : > { %v2185_v53 = vpop.permute.xlu0 %2184  ;;  %v2187_v24 = vpop.permute.xlu1 %2186 }
 0x1d2   : > { %2277 = vst.msk [vmem:[#allocation3 + $0x20] sm:$0xff] %vm2272_vm12, %v2185_v53  ;;  %v1345_v53 = vld [vmem:[#allocation2 + $0x61] sm:$0xff] }
 0x1d3   : > { %2019 = vrot.lane.b32.xlu0 %v782_v14, %s3049_s25  ;;  %1063 = vrot.lane.b32.xlu1 %v976_v25, %s3045_s13 }
 0x1d5   : > { %v845_v5 = vpop.permute.xlu0 %844  ;;  %v1225_v27 = vpop.permute.xlu1 %1224 }
 0x1d6   : > { %931 = vst.msk [vmem:[#allocation3 + $0x50] sm:$0xff] %vm920_vm5, %v845_v5 }
 0x1d7   : > { %1314 = vst.msk [vmem:[#allocation3 + $0x38] sm:$0xff] %vm1306_vm7, %v1225_v27  ;;  %2212 = vrot.lane.b32.xlu0 %v975_v4, %s3050_s26  ;;  %2021 = vrot.lane.b32.xlu1 %v783_v42, %s3049_s25  ;;  %v2978_v27 = vld [vmem:[%s4236_s2] ss:$0 sm:$0xff] }
 0x1d9   : > { %v1038_v29 = vpop.permute.xlu0 %1037  ;;  %v1801_v31 = vpop.permute.xlu1 %1800 }
 0x1da   : > { %1124 = vst.msk [vmem:[#allocation3 + $0x50] sm:$0xff] %vm1113_vm6, %v1038_v29 }
 0x1db   : > { %1892 = vst.msk [vmem:[#allocation3 + $0x28] sm:$0xff] %vm1886_vm10, %v1801_v31  ;;  %1250 = vrot.lane.b32.xlu0 %v3425_v18, %s3048_s23  ;;  %2214 = vrot.lane.b32.xlu1 %v976_v25, %s3050_s26  ;;  %v3638_v18 = vld [vmem:[#allocation2 + $0x121] sm:$0xff] }
 0x1dc   : > { %2085 = vst.msk [vmem:[#allocation3 + $0x28] sm:$0xff] %vm2079_vm11, %v1994_v23 }
 0x1dd   : > { %2278 = vst.msk [vmem:[#allocation3 + $0x28] sm:$0xff] %vm2272_vm12, %v2187_v24  ;;  %v1227_v32 = vpop.permute.xlu0 %1226  ;;  %v847_v54 = vpop.permute.xlu1 %846 }
 0x1de   : > { %1315 = vst.msk [vmem:[#allocation3 + $0x40] sm:$0xff] %vm1306_vm7, %v1227_v32 }
 0x1df   : > { %932 = vst.msk [vmem:[#allocation3 + $0x58] sm:$0xff] %vm920_vm5, %v847_v54  ;;  %1443 = vrot.lane.b32.xlu0 %v782_v14, %s3046_s16  ;;  %1445 = vrot.lane.b32.xlu1 %v783_v42, %s3046_s16 }
 0x1e1   : > { %v849_v33 = vpop.permute.xlu0 %848  ;;  %v1040_v34 = vpop.permute.xlu1 %1039 }
 0x1e2   : > { %933 = vst.msk [vmem:[#allocation3 + $0x60] sm:$0xff] %vm920_vm5, %v849_v33  ;;  %v1538_v33 = vld [vmem:[#allocation2 + $0x62] sm:$0xff] }
 0x1e3   : > { %1125 = vst.msk [vmem:[#allocation3 + $0x58] sm:$0xff] %vm1113_vm6, %v1040_v34  ;;  %1636 = vrot.lane.b32.xlu0 %v975_v4, %s3047_s17  ;;  %1638 = vrot.lane.b32.xlu1 %v976_v25, %s3047_s17  ;;  %v1346_v34 = vld [vmem:[#allocation2 + $0x69] sm:$0xff] }
 0x1e5   : > { %v1042_v36 = vpop.permute.xlu0 %1041  ;;  %v1229_v38 = vpop.permute.xlu1 %1228 }
 0x1e6   : > { %1126 = vst.msk [vmem:[#allocation3 + $0x60] sm:$0xff] %vm1113_vm6, %v1042_v36  ;;  %v2861_v5 = vpop.f32.mrb[30].mxu0 }
 0x1e7   : > { %1316 = vst.msk [vmem:[#allocation3 + $0x48] sm:$0xff] %vm1306_vm7, %v1229_v38  ;;  %872 = vrot.lane.b32.xlu0 %v3638_v18, %s3044_s12  ;;  %1828 = vrot.lane.b32.xlu1 %v3430_v19, %s3051_s30  ;;  %v586_v29 = vadd.f32 %v2978_v27, %v2861_v5  ;;  %v580_v31 = vpop.f32.mrb[31].mxu0 }
 0x1e9   : > { %v1231_v30 = vpop.permute.xlu0 %1230  ;;  %v851_v43 = vpop.permute.xlu1 %850 }
 0x1ea   : > { %1317 = vst.msk [vmem:[#allocation3 + $0x50] sm:$0xff] %vm1306_vm7, %v1231_v30 }
 0x1eb   : > { %934 = vst.msk [vmem:[#allocation3 + $0x68] sm:$0xff] %vm920_vm5, %v851_v43  ;;  %1065 = vrot.lane.b32.xlu0 %v3646_v40, %s3045_s13  ;;  %1252 = vrot.lane.b32.xlu1 %v3430_v19, %s3048_s23  ;;  %v3664_v19 = vld [vmem:[#allocation2 + $0x12a] sm:$0xff] }
 0x1ed   : > { %v853_v47 = vpop.permute.xlu0 %852  ;;  %v1044_v48 = vpop.permute.xlu1 %1043 }
 0x1ee   : > { %935 = vst.msk [vmem:[#allocation3 + $0x70] sm:$0xff] %vm920_vm5, %v853_v47 }
 0x1ef   : > { %1127 = vst.msk [vmem:[#allocation3 + $0x68] sm:$0xff] %vm1113_vm6, %v1044_v48  ;;  %1830 = vrot.lane.b32.xlu0 %v3461_v41, %s3051_s30  ;;  %874 = vrot.lane.b32.xlu1 %v3654_v46, %s3044_s12 }
 0x1f1   : > { %v1046_v50 = vpop.permute.xlu0 %1045  ;;  %v1233_v57 = vpop.permute.xlu1 %1232 }
 0x1f2   : > { %1128 = vst.msk [vmem:[#allocation3 + $0x70] sm:$0xff] %vm1113_vm6, %v1046_v50 }
 0x1f3   : > { %1318 = vst.msk [vmem:[#allocation3 + $0x58] sm:$0xff] %vm1306_vm7, %v1233_v57  ;;  %2023 = vrot.lane.b32.xlu0 %v3638_v18, %s3049_s25  ;;  %1067 = vrot.lane.b32.xlu1 %v3664_v19, %s3045_s13 }
 0x1f5   : > { %v1235_v51 = vpop.permute.xlu0 %1234  ;;  %v855_v52 = vpop.permute.xlu1 %854 }
 0x1f6   : > { %1319 = vst.msk [vmem:[#allocation3 + $0x60] sm:$0xff] %vm1306_vm7, %v1235_v51 }
 0x1f7   : > { %936 = vst.msk [vmem:[#allocation3 + $0x78] sm:$0xff] %vm920_vm5, %v855_v52  ;;  %2216 = vrot.lane.b32.xlu0 %v3646_v40, %s3050_s26  ;;  %2025 = vrot.lane.b32.xlu1 %v3654_v46, %s3049_s25 }
 0x1f9   : > { %v857_v58 = vpop.permute.xlu0 %856  ;;  %v1048_v59 = vpop.permute.xlu1 %1047 }
 0x1fa   : > { %937 = vst.msk [vmem:[#allocation3 + $0x80] sm:$0xff] %vm920_vm5, %v857_v58 }
 0x1fb   : > { %1129 = vst.msk [vmem:[#allocation3 + $0x78] sm:$0xff] %vm1113_vm6, %v1048_v59  ;;  %876 = vrot.lane.b32.xlu0 %v3676_v55, %s3044_s12  ;;  %2218 = vrot.lane.b32.xlu1 %v3664_v19, %s3050_s26  ;;  %v2118_v59 = vld [vmem:[#allocation2 + $0x7a] sm:$0xff] }
 0x1fd   : > { %v1050_v63 = vpop.permute.xlu0 %1049  ;;  %v1237_v0 = vpop.permute.xlu1 %1236 }
 0x1fe   : > { %1130 = vst.msk [vmem:[#allocation3 + $0x80] sm:$0xff] %vm1113_vm6, %v1050_v63 }
 0x1ff   : > { %1320 = vst.msk [vmem:[#allocation3 + $0x68] sm:$0xff] %vm1306_vm7, %v1237_v0  ;;  %1069 = vrot.lane.b32.xlu0 %v3684_v62, %s3045_s13  ;;  %1832 = vrot.lane.b32.xlu1 %v3466_v44, %s3051_s30 }
 0x201   : > { %v1239_v1 = vpop.permute.xlu0 %1238  ;;  %v859_v2 = vpop.permute.xlu1 %858 }
 0x202   : > { %1321 = vst.msk [vmem:[#allocation3 + $0x70] sm:$0xff] %vm1306_vm7, %v1239_v1  ;;  %v2309_v1 = vld [vmem:[#allocation3] sm:$0xff] }
 0x203   : > { %938 = vst.msk [vmem:[#allocation3 + $0x88] sm:$0xff] %vm920_vm5, %v859_v2  ;;  %880 = vrot.lane.b32.xlu0 %v3692_v60, %s3044_s12  ;;  %878 = vrot.lane.b32.xlu1 %v3694_v61, %s3044_s12 }
 0x205   : > { %v1438_v6 = vpop.permute.xlu0 %1437  ;;  %v1052_v7 = vpop.permute.xlu1 %1051 }
 0x206   : > { %1131 = vst.msk [vmem:[#allocation3 + $0x88] sm:$0xff] %vm1113_vm6, %v1052_v7 }
 0x207   : > { %1073 = vrot.lane.b32.xlu0 %v3702_v3, %s3045_s13  ;;  %1071 = vrot.lane.b32.xlu1 %v3705_v45, %s3045_s13 }
 0x209   : > { %v1631_v10 = vpop.permute.xlu0 %1630  ;;  %v1241_v11 = vpop.permute.xlu1 %1240 }
 0x20a   : > { %1322 = vst.msk [vmem:[#allocation3 + $0x78] sm:$0xff] %vm1306_vm7, %v1241_v11 }
 0x20b   : > { %884 = vrot.lane.b32.xlu0 %v3711_v8, %s3044_s12  ;;  %882 = vrot.lane.b32.xlu1 %v3713_v9, %s3044_s12 }
 0x20d   : > { %v861_v13 = vpop.permute.xlu0 %860  ;;  %v863_v14 = vpop.permute.xlu1 %862 }
 0x20e   : > { %939 = vst.msk [vmem:[#allocation3 + $0x90] sm:$0xff] %vm920_vm5, %v861_v13  ;;  %940 = vst.msk [vmem:[#allocation3 + $0x98] sm:$0xff] %vm920_vm5, %v863_v14  ;;  %v2310_v14 = vld [vmem:[#allocation3 + $0x8] sm:$0xff] }
 0x20f   : > { %1077 = vrot.lane.b32.xlu0 %v3720_v12, %s3045_s13  ;;  %1075 = vrot.lane.b32.xlu1 %v3724_v15, %s3045_s13 }
 0x211   : > { %v1054_v4 = vpop.permute.xlu0 %1053  ;;  %v1056_v17 = vpop.permute.xlu1 %1055 }
 0x212   : > { %1132 = vst.msk [vmem:[#allocation3 + $0x90] sm:$0xff] %vm1113_vm6, %v1054_v4  ;;  %1133 = vst.msk [vmem:[#allocation3 + $0x98] sm:$0xff] %vm1113_vm6, %v1056_v17  ;;  %v2865_v4 = vpack.c.bf16 %v2310_v14, %v2309_v1  ;;  %v1929_v14 = vld [vmem:[#allocation2 + $0xa9] sm:$0xff] }
 0x213   : > { %1254 = vrot.lane.b32.xlu0 %v3461_v41, %s3048_s23  ;;  %886 = vrot.lane.b32.xlu1 %v3730_v16, %s3044_s12  ;;  %s2738_s12 = sshll.u32 %s3106_s22, 10  ;;  %s4192_s22 = scalar_lea.sflag [#allocation5], %s215_s9 }
 0x215   : > { %v1243_v20 = vpop.permute.xlu0 %1242  ;;  %v1245_v42 = vpop.permute.xlu1 %1244 }
 0x216   : > { %1323 = vst.msk [vmem:[#allocation3 + $0x80] sm:$0xff] %vm1306_vm7, %v1243_v20  ;;  %1324 = vst.msk [vmem:[#allocation3 + $0x88] sm:$0xff] %vm1306_vm7, %v1245_v42 }
 0x217   : > { %1517 = vst.msk [vmem:[#allocation3 + $0x88] sm:$0xff] %vm1499_vm8, %v1438_v6  ;;  %1447 = vrot.lane.b32.xlu0 %v3638_v18, %s3046_s16  ;;  %1079 = vrot.lane.b32.xlu1 %v3740_v21, %s3045_s13  ;;  %v620_v18 = vmax.f32 %v586_v29, 0.0  ;;  %v1927_v29 = vld [vmem:[#allocation2 + $0x91] sm:$0xff] }
 0x218   : > { %1710 = vst.msk [vmem:[#allocation3 + $0x88] sm:$0xff] %vm1692_vm9, %v1631_v10 }
 0x219   : > { %v2018_v41 = vpop.permute.xlu0 %2017  ;;  %v1436_v23 = vpop.permute.xlu1 %1435  ;;  %695 = vst.msk [vmem:[#allocation2 + $0x189] sm:$0xff] %vm621_vm2, %v620_v18 }
 0x21a   : > { %1516 = vst.msk [vmem:[#allocation3 + $0x80] sm:$0xff] %vm1499_vm8, %v1436_v23 }
 0x21b   : > { %1415 = vrot.lane.b32.xlu0 %v1345_v53, %s3046_s16  ;;  %1256 = vrot.lane.b32.xlu1 %v3466_v44, %s3048_s23  ;;  %v581_v44 = vadd.f32 %v2978_v27, %v580_v31  ;;  %v1735_v31 = vld [vmem:[#allocation2 + $0x98] sm:$0xff] }
 0x21d   : > { %v2211_v24 = vpop.permute.xlu0 %2210  ;;  %v1629_v25 = vpop.permute.xlu1 %1628  ;;  %v619_v36 = vmax.f32 %v581_v44, 0.0 }
 0x21e   : > { %1709 = vst.msk [vmem:[#allocation3 + $0x80] sm:$0xff] %vm1692_vm9, %v1629_v25 }
 0x21f   : > { %1640 = vrot.lane.b32.xlu0 %v3646_v40, %s3047_s17  ;;  %1449 = vrot.lane.b32.xlu1 %v3654_v46, %s3046_s16  ;;  %694 = vst.msk [vmem:[#allocation2 + $0x181] sm:$0xff] %vm621_vm2, %v619_v36  ;;  %v1539_v46 = vld [vmem:[#allocation2 + $0x6a] sm:$0xff] }
 0x221   : > { %v865_v32 = vpop.permute.xlu0 %864  ;;  %v867_v54 = vpop.permute.xlu1 %866 }
 0x222   : > { %941 = vst.msk [vmem:[#allocation3 + $0xa0] sm:$0xff] %vm920_vm5, %v865_v32  ;;  %942 = vst.msk [vmem:[#allocation3 + $0xa8] sm:$0xff] %vm920_vm5, %v867_v54 }
 0x223   : > { %1608 = vrot.lane.b32.xlu0 %v1538_v33, %s3047_s17  ;;  %1417 = vrot.lane.b32.xlu1 %v1346_v34, %s3046_s16  ;;  %v2312_v34 = vld [vmem:[#allocation3 + $0x18] sm:$0xff] }
 0x225   : > { %v1058_v38 = vpop.permute.xlu0 %1057  ;;  %v1060_v40 = vpop.permute.xlu1 %1059 }
 0x226   : > { %1134 = vst.msk [vmem:[#allocation3 + $0xa0] sm:$0xff] %vm1113_vm6, %v1058_v38  ;;  %1135 = vst.msk [vmem:[#allocation3 + $0xa8] sm:$0xff] %vm1113_vm6, %v1060_v40  ;;  %v2311_v40 = vld [vmem:[#allocation3 + $0x10] sm:$0xff] }
 0x227   : > { %1834 = vrot.lane.b32.xlu0 %v3505_v22, %s3051_s30  ;;  %1642 = vrot.lane.b32.xlu1 %v3664_v19, %s3047_s17 }
 0x229   : > { %v1247_v30 = vpop.permute.xlu0 %1246  ;;  %v1442_v43 = vpop.permute.xlu1 %1441 }
 0x22a   : > { %1325 = vst.msk [vmem:[#allocation3 + $0x90] sm:$0xff] %vm1306_vm7, %v1247_v30  ;;  %v2120_v30 = vld [vmem:[#allocation2 + $0x92] sm:$0xff] }
 0x22b   : > { %1802 = vrot.lane.b32.xlu0 %v3316_v35, %s3051_s30  ;;  %1610 = vrot.lane.b32.xlu1 %v1539_v46, %s3047_s17  ;;  %v1925_v35 = vld [vmem:[#allocation2 + $0x79] sm:$0xff]  ;;  %v2871_v46 = vpack.c.bf16 %v2312_v34, %v2311_v40 }
 0x22d   : > { %v1825_v47 = vpop.permute.xlu0 %1824  ;;  %v1635_v48 = vpop.permute.xlu1 %1634 }
 0x22e   : > { %1904 = vst.msk [vmem:[#allocation3 + $0x88] sm:$0xff] %vm1886_vm10, %v1825_v47 }
 0x22f   : > { %2097 = vst.msk [vmem:[#allocation3 + $0x88] sm:$0xff] %vm2079_vm11, %v2018_v41  ;;  %2027 = vrot.lane.b32.xlu0 %v3676_v55, %s3049_s25  ;;  %1836 = vrot.lane.b32.xlu1 %v3507_v49, %s3051_s30 }
 0x230   : > { %2290 = vst.msk [vmem:[#allocation3 + $0x88] sm:$0xff] %vm2272_vm12, %v2211_v24  ;;  %v1734_v24 = vld [vmem:[#allocation2 + $0x90] sm:$0xff] }
 0x231   : > { %v1440_v50 = vpop.permute.xlu0 %1439  ;;  %v1823_v57 = vpop.permute.xlu1 %1822 }
 0x232   : > { %1518 = vst.msk [vmem:[#allocation3 + $0x90] sm:$0xff] %vm1499_vm8, %v1440_v50 }
 0x233   : > { %1903 = vst.msk [vmem:[#allocation3 + $0x80] sm:$0xff] %vm1886_vm10, %v1823_v57  ;;  %1995 = vrot.lane.b32.xlu0 %v1925_v35, %s3049_s25  ;;  %1804 = vrot.lane.b32.xlu1 %v3321_v39, %s3051_s30  ;;  %v1926_v39 = vld [vmem:[#allocation2 + $0x81] sm:$0xff] }
 0x235   : > { %v1633_v19 = vpop.permute.xlu0 %1632  ;;  %v2016_v51 = vpop.permute.xlu1 %2015 }
 0x236   : > { %1711 = vst.msk [vmem:[#allocation3 + $0x90] sm:$0xff] %vm1692_vm9, %v1633_v19 }
 0x237   : > { %2096 = vst.msk [vmem:[#allocation3 + $0x80] sm:$0xff] %vm2079_vm11, %v2016_v51  ;;  %2220 = vrot.lane.b32.xlu0 %v3684_v62, %s3050_s26  ;;  %2029 = vrot.lane.b32.xlu1 %v3694_v61, %s3049_s25  ;;  %v2326_v10 = vld [vmem:[#allocation3 + $0x88] sm:$0xff] }
 0x239   : > { %v869_v52 = vpop.permute.xlu0 %868  ;;  %v2209_v58 = vpop.permute.xlu1 %2208 }
 0x23a   : > { %943 = vst.msk [vmem:[#allocation3 + $0xb0] sm:$0xff] %vm920_vm5, %v869_v52 }
 0x23b   : > { %2289 = vst.msk [vmem:[#allocation3 + $0x80] sm:$0xff] %vm2272_vm12, %v2209_v58  ;;  %2188 = vrot.lane.b32.xlu0 %v2118_v59, %s3050_s26  ;;  %1997 = vrot.lane.b32.xlu1 %v1926_v39, %s3049_s25 }
 0x23d   : > { %v1062_v63 = vpop.permute.xlu0 %1061  ;;  %v1249_v0 = vpop.permute.xlu1 %1248 }
 0x23e   : > { %1136 = vst.msk [vmem:[#allocation3 + $0xb0] sm:$0xff] %vm1113_vm6, %v1062_v63 }
 0x23f   : > { %1326 = vst.msk [vmem:[#allocation3 + $0x98] sm:$0xff] %vm1306_vm7, %v1249_v0  ;;  %1258 = vrot.lane.b32.xlu0 %v3505_v22, %s3048_s23  ;;  %2222 = vrot.lane.b32.xlu1 %v3705_v45, %s3050_s26  ;;  %v2119_v22 = vld [vmem:[#allocation2 + $0x82] sm:$0xff] }
 0x240   : > { %1519 = vst.msk [vmem:[#allocation3 + $0x98] sm:$0xff] %vm1499_vm8, %v1442_v43  ;;  %v1928_v43 = vld [vmem:[#allocation2 + $0x99] sm:$0xff] }
 0x241   : > { %1712 = vst.msk [vmem:[#allocation3 + $0x98] sm:$0xff] %vm1692_vm9, %v1635_v48  ;;  %v1827_v2 = vpop.permute.xlu0 %1826  ;;  %v871_v6 = vpop.permute.xlu1 %870 }
 0x242   : > { %v2325_v7 = vld [vmem:[#allocation3 + $0x80] sm:$0xff]  ;;  %1905 = vst.msk [vmem:[#allocation3 + $0x90] sm:$0xff] %vm1886_vm10, %v1827_v2 }
 0x243   : > { %944 = vst.msk [vmem:[#allocation3 + $0xb8] sm:$0xff] %vm920_vm5, %v871_v6  ;;  %v2862_v13 = vpack.c.bf16 %v2326_v10, %v2325_v7  ;;  %1451 = vrot.lane.b32.xlu0 %v3676_v55, %s3046_s16  ;;  %2190 = vrot.lane.b32.xlu1 %v2119_v22, %s3050_s26  ;;  %v1736_v7 = vld [vmem:[#allocation2 + $0xa8] sm:$0xff] }
 0x245   : > { %2864 = vmatprep.subr.msk.bf16.mxu0 %vm3808_vm14, %v2862_v13  ;;  %2910 = vmatprep.subr.msk.bf16.mxu1 %vm3808_vm14, %v2862_v13  ;;  %v2020_v17 = vpop.permute.xlu0 %2019  ;;  %v1064_v20 = vpop.permute.xlu1 %1063 }
 0x246   : > { %2867 = vmatpush3.bf16.xpose.msk.msra.mxu0 %vm3808_vm14, %v2865_v4  ;;  %2918 = vmatpush3.bf16.xpose.msk.msra.mxu1 %vm3808_vm14, %v2865_v4  ;;  %2098 = vst.msk [vmem:[#allocation3 + $0x90] sm:$0xff] %vm2079_vm11, %v2020_v17  ;;  %v1737_v4 = vld [vmem:[#allocation2 + $0xb0] sm:$0xff] }
 0x247   : > { %1137 = vst.msk [vmem:[#allocation3 + $0xb8] sm:$0xff] %vm1113_vm6, %v1064_v20  ;;  %1419 = vrot.lane.b32.xlu0 %v1925_v35, %s3046_s16  ;;  %1260 = vrot.lane.b32.xlu1 %v3507_v49, %s3048_s23  ;;  %v2121_v35 = vld [vmem:[#allocation2 + $0x9a] sm:$0xff] }
 0x249   : > { %v2213_v55 = vpop.permute.xlu0 %2212  ;;  %v2022_v42 = vpop.permute.xlu1 %2021 }
 0x24a   : > { %2291 = vst.msk [vmem:[#allocation3 + $0x90] sm:$0xff] %vm2272_vm12, %v2213_v55 }
 0x24b   : > { %1644 = vrot.lane.b32.xlu0 %v3684_v62, %s3047_s17  ;;  %1453 = vrot.lane.b32.xlu1 %v3694_v61, %s3046_s16 }
 0x24d   : > { %v1251_v41 = vpop.permute.xlu0 %1250  ;;  %v2215_v23 = vpop.permute.xlu1 %2214 }
 0x24e   : > { %1327 = vst.msk [vmem:[#allocation3 + $0xa0] sm:$0xff] %vm1306_vm7, %v1251_v41  ;;  %v2122_v41 = vld [vmem:[#allocation2 + $0xaa] sm:$0xff] }
 0x24f   : > { %1612 = vrot.lane.b32.xlu0 %v2118_v59, %s3047_s17  ;;  %1421 = vrot.lane.b32.xlu1 %v1926_v39, %s3046_s16  ;;  %v2314_v39 = vld [vmem:[#allocation3 + $0x28] sm:$0xff] }
 0x251   : > { %v1444_v53 = vpop.permute.xlu0 %1443  ;;  %v1446_v49 = vpop.permute.xlu1 %1445  ;;  %v2327_v44 = vld [vmem:[#allocation3 + $0x90] sm:$0xff] }
 0x252   : > { %1520 = vst.msk [vmem:[#allocation3 + $0xa0] sm:$0xff] %vm1499_vm8, %v1444_v53 }
 0x253   : > { %1838 = vrot.lane.b32.xlu0 %v3522_v28, %s3051_s30  ;;  %1646 = vrot.lane.b32.xlu1 %v3705_v45, %s3047_s17 }
 0x255   : > { %v1637_v62 = vpop.permute.xlu0 %1636  ;;  %v1639_v61 = vpop.permute.xlu1 %1638 }
 0x256   : > { %1713 = vst.msk [vmem:[#allocation3 + $0xa0] sm:$0xff] %vm1692_vm9, %v1637_v62 }
 0x257   : > { %1806 = vrot.lane.b32.xlu0 %v1734_v24, %s3051_s30  ;;  %1614 = vrot.lane.b32.xlu1 %v2119_v22, %s3047_s17  ;;  %v2123_v24 = vld [vmem:[#allocation2 + $0xb2] sm:$0xff] }
 0x259   : > { %v873_v25 = vpop.permute.xlu0 %872  ;;  %v1829_v5 = vpop.permute.xlu1 %1828 }
 0x25a   : > { %945 = vst.msk [vmem:[#allocation3 + $0xc0] sm:$0xff] %vm920_vm5, %v873_v25 }
 0x25b   : > { %1906 = vst.msk [vmem:[#allocation3 + $0x98] sm:$0xff] %vm1886_vm10, %v1829_v5  ;;  %2031 = vrot.lane.b32.xlu0 %v3692_v60, %s3049_s25  ;;  %1840 = vrot.lane.b32.xlu1 %v3524_v26, %s3051_s30 }
 0x25c   : > { %2099 = vst.msk [vmem:[#allocation3 + $0x98] sm:$0xff] %vm2079_vm11, %v2022_v42 }
 0x25d   : > { %2292 = vst.msk [vmem:[#allocation3 + $0x98] sm:$0xff] %vm2272_vm12, %v2215_v23  ;;  %v1066_v45 = vpop.permute.xlu0 %1065  ;;  %v1253_v27 = vpop.permute.xlu1 %1252  ;;  %v1930_v23 = vld [vmem:[#allocation2 + $0xb1] sm:$0xff] }
 0x25e   : > { %1138 = vst.msk [vmem:[#allocation3 + $0xc0] sm:$0xff] %vm1113_vm6, %v1066_v45 }
 0x25f   : > { %1328 = vst.msk [vmem:[#allocation3 + $0xa8] sm:$0xff] %vm1306_vm7, %v1253_v27  ;;  %1999 = vrot.lane.b32.xlu0 %v1927_v29, %s3049_s25  ;;  %1808 = vrot.lane.b32.xlu1 %v1735_v31, %s3051_s30 }
 0x260   : > { %1521 = vst.msk [vmem:[#allocation3 + $0xa8] sm:$0xff] %vm1499_vm8, %v1446_v49 }
 0x261   : > { %1714 = vst.msk [vmem:[#allocation3 + $0xa8] sm:$0xff] %vm1692_vm9, %v1639_v61  ;;  %v1831_v32 = vpop.permute.xlu0 %1830  ;;  %v875_v54 = vpop.permute.xlu1 %874 }
 0x262   : > { %1907 = vst.msk [vmem:[#allocation3 + $0xa0] sm:$0xff] %vm1886_vm10, %v1831_v32  ;;  %v1738_v32 = vld [vmem:[#allocation2 + $0xc0] sm:$0xff] }
 0x263   : > { %946 = vst.msk [vmem:[#allocation3 + $0xc8] sm:$0xff] %vm920_vm5, %v875_v54  ;;  %2224 = vrot.lane.b32.xlu0 %v3702_v3, %s3050_s26  ;;  %2033 = vrot.lane.b32.xlu1 %v3713_v9, %s3049_s25  ;;  %v1947_v54 = vld [vmem:[#allocation2 + $0x181] sm:$0xff] }
 0x264   : > { %v2328_v33 = vld [vmem:[#allocation3 + $0x98] sm:$0xff] }
 0x265   : > { %v2868_v18 = vpack.c.bf16 %v2328_v33, %v2327_v44  ;;  %v2024_v36 = vpop.permute.xlu0 %2023  ;;  %v1068_v38 = vpop.permute.xlu1 %1067  ;;  %v1755_v44 = vld [vmem:[#allocation2 + $0x188] sm:$0xff] }
 0x266   : > { %2100 = vst.msk [vmem:[#allocation3 + $0xa0] sm:$0xff] %vm2079_vm11, %v2024_v36  ;;  %v1931_v36 = vld [vmem:[#allocation2 + $0xc1] sm:$0xff] }
 0x267   : > { %1139 = vst.msk [vmem:[#allocation3 + $0xc8] sm:$0xff] %vm1113_vm6, %v1068_v38  ;;  %2870 = vmatprep.subr.msk.bf16.mxu0 %vm3808_vm14, %v2868_v18  ;;  %2911 = vmatprep.subr.msk.bf16.mxu1 %vm3808_vm14, %v2868_v18  ;;  %v1739_v38 = vld [vmem:[#allocation2 + $0xc8] sm:$0xff] }
 0x268   : > { %2192 = vrot.lane.b32.xlu0 %v2120_v30, %s3050_s26  ;;  %2001 = vrot.lane.b32.xlu1 %v1928_v43, %s3049_s25 }
 0x269   : > { %2873 = vmatpush3.bf16.xpose.msk.msra.mxu0 %vm3808_vm14, %v2871_v46  ;;  %2919 = vmatpush3.bf16.xpose.msk.msra.mxu1 %vm3808_vm14, %v2871_v46  ;;  %v2217_v47 = vpop.permute.xlu0 %2216  ;;  %v2026_v48 = vpop.permute.xlu1 %2025 }
 0x26a   : > { %2293 = vst.msk [vmem:[#allocation3 + $0xa0] sm:$0xff] %vm2272_vm12, %v2217_v47  ;;  %v2140_v47 = vld [vmem:[#allocation2 + $0x182] sm:$0xff] }
 0x26c   : > { %1262 = vrot.lane.b32.xlu0 %v3522_v28, %s3048_s23  ;;  %2226 = vrot.lane.b32.xlu1 %v3724_v15, %s3050_s26 }
 0x26d   : > { %v877_v50 = vpop.permute.xlu0 %876  ;;  %v2219_v57 = vpop.permute.xlu1 %2218 }
 0x26e   : > { %947 = vst.msk [vmem:[#allocation3 + $0xd0] sm:$0xff] %vm920_vm5, %v877_v50 }
 0x270   : > { %1455 = vrot.lane.b32.xlu0 %v3692_v60, %s3046_s16  ;;  %2194 = vrot.lane.b32.xlu1 %v2121_v35, %s3050_s26 }
 0x271   : > { %v1070_v19 = vpop.permute.xlu0 %1069  ;;  %v1833_v51 = vpop.permute.xlu1 %1832 }
 0x272   : > { %1140 = vst.msk [vmem:[#allocation3 + $0xd0] sm:$0xff] %vm1113_vm6, %v1070_v19 }
 0x273   : > { %1908 = vst.msk [vmem:[#allocation3 + $0xa8] sm:$0xff] %vm1886_vm10, %v1833_v51 }
 0x274   : > { %2101 = vst.msk [vmem:[#allocation3 + $0xa8] sm:$0xff] %vm2079_vm11, %v2026_v48  ;;  %1423 = vrot.lane.b32.xlu0 %v1927_v29, %s3046_s16  ;;  %1264 = vrot.lane.b32.xlu1 %v3524_v26, %s3048_s23  ;;  %v2329_v26 = vld [vmem:[#allocation3 + $0xa0] sm:$0xff] }
 0x275   : > { %2294 = vst.msk [vmem:[#allocation3 + $0xa8] sm:$0xff] %vm2272_vm12, %v2219_v57  ;;  %v881_v28 = vpop.permute.xlu0 %880  ;;  %v879_v52 = vpop.permute.xlu1 %878  ;;  %v1948_v48 = vld [vmem:[#allocation2 + $0x189] sm:$0xff] }
 0x276   : > { %949 = vst.msk [vmem:[#allocation3 + $0xe0] sm:$0xff] %vm920_vm5, %v881_v28  ;;  %948 = vst.msk [vmem:[#allocation3 + $0xd8] sm:$0xff] %vm920_vm5, %v879_v52  ;;  %v2124_v28 = vld [vmem:[#allocation2 + $0xc2] sm:$0xff] }
 0x277   : > { %v1932_v52 = vld [vmem:[#allocation2 + $0xc9] sm:$0xff] }
 0x278   : > { %1648 = vrot.lane.b32.xlu0 %v3702_v3, %s3047_s17  ;;  %1457 = vrot.lane.b32.xlu1 %v3713_v9, %s3046_s16  ;;  %v2313_v3 = vld [vmem:[#allocation3 + $0x20] sm:$0xff] }
 0x279   : > { %v1074_v60 = vpop.permute.xlu0 %1073  ;;  %v1072_v58 = vpop.permute.xlu1 %1071  ;;  %v2877_v9 = vpack.c.bf16 %v2314_v39, %v2313_v3 }
 0x27a   : > { %1142 = vst.msk [vmem:[#allocation3 + $0xe0] sm:$0xff] %vm1113_vm6, %v1074_v60  ;;  %1141 = vst.msk [vmem:[#allocation3 + $0xd8] sm:$0xff] %vm1113_vm6, %v1072_v58 }
 0x27c   : > { %1616 = vrot.lane.b32.xlu0 %v2120_v30, %s3047_s17  ;;  %1425 = vrot.lane.b32.xlu1 %v1928_v43, %s3046_s16  ;;  %v2330_v59 = vld [vmem:[#allocation3 + $0xa8] sm:$0xff] }
 0x27d   : > { %v2874_v63 = vpack.c.bf16 %v2330_v59, %v2329_v26  ;;  %v885_v0 = vpop.permute.xlu0 %884  ;;  %v883_v1 = vpop.permute.xlu1 %882  ;;  %v2141_v59 = vld [vmem:[#allocation2 + $0x18a] sm:$0xff] }
 0x27e   : > { %951 = vst.msk [vmem:[#allocation3 + $0xf0] sm:$0xff] %vm920_vm5, %v885_v0  ;;  %950 = vst.msk [vmem:[#allocation3 + $0xe8] sm:$0xff] %vm920_vm5, %v883_v1  ;;  %v2125_v0 = vld [vmem:[#allocation2 + $0xca] sm:$0xff] }
 0x27f   : > { %2876 = vmatprep.subr.msk.bf16.mxu0 %vm3808_vm14, %v2874_v63  ;;  %2912 = vmatprep.subr.msk.bf16.mxu1 %vm3808_vm14, %v2874_v63 }
 0x280   : > { %1842 = vrot.lane.b32.xlu0 %v3535_v37, %s3051_s30  ;;  %1650 = vrot.lane.b32.xlu1 %v3724_v15, %s3047_s17 }
 0x281   : > { %2879 = vmatpush3.bf16.xpose.msk.msra.mxu0 %vm3808_vm14, %v2877_v9  ;;  %2920 = vmatpush3.bf16.xpose.msk.msra.mxu1 %vm3808_vm14, %v2877_v9  ;;  %v1078_v2 = vpop.permute.xlu0 %1077  ;;  %v1076_v6 = vpop.permute.xlu1 %1075 }
 0x282   : > { %1144 = vst.msk [vmem:[#allocation3 + $0xf0] sm:$0xff] %vm1113_vm6, %v1078_v2  ;;  %1143 = vst.msk [vmem:[#allocation3 + $0xe8] sm:$0xff] %vm1113_vm6, %v1076_v6 }
 0x284   : > { %1810 = vrot.lane.b32.xlu0 %v1736_v7, %s3051_s30  ;;  %1618 = vrot.lane.b32.xlu1 %v2121_v35, %s3047_s17 }
 0x285   : > { %v1255_v10 = vpop.permute.xlu0 %1254  ;;  %v887_v22 = vpop.permute.xlu1 %886 }
 0x286   : > { %1329 = vst.msk [vmem:[#allocation3 + $0xb0] sm:$0xff] %vm1306_vm7, %v1255_v10  ;;  %v1756_v10 = vld [vmem:[#allocation2 + $0x198] sm:$0xff] }
 0x287   : > { %952 = vst.msk [vmem:[#allocation3 + $0xf8] sm:$0xff] %vm920_vm5, %v887_v22 }
 0x288   : > { %2035 = vrot.lane.b32.xlu0 %v3711_v8, %s3049_s25  ;;  %1844 = vrot.lane.b32.xlu1 %v3542_v56, %s3051_s30 }
 0x289   : > { %v1448_v15 = vpop.permute.xlu0 %1447  ;;  %v1080_v13 = vpop.permute.xlu1 %1079 }
 0x28a   : > { %1522 = vst.msk [vmem:[#allocation3 + $0xb0] sm:$0xff] %vm1499_vm8, %v1448_v15 }
 0x28b   : > { %1145 = vst.msk [vmem:[#allocation3 + $0xf8] sm:$0xff] %vm1113_vm6, %v1080_v13 }
 0x28c   : > { %2003 = vrot.lane.b32.xlu0 %v1929_v14, %s3049_s25  ;;  %1812 = vrot.lane.b32.xlu1 %v1737_v4, %s3051_s30  ;;  %v1740_v4 = vld [vmem:[#allocation2 + $0xd8] sm:$0xff] }
 0x28d   : > { %v1416_v17 = vpop.permute.xlu0 %1415  ;;  %v1257_v20 = vpop.permute.xlu1 %1256 }
 0x28e   : > { %1506 = vst.msk [vmem:[#allocation3 + $0x30] sm:$0xff] %vm1499_vm8, %v1416_v17  ;;  %v1949_v17 = vld [vmem:[#allocation2 + $0x199] sm:$0xff] }
 0x28f   : > { %1330 = vst.msk [vmem:[#allocation3 + $0xb8] sm:$0xff] %vm1306_vm7, %v1257_v20  ;;  %v1757_v20 = vld [vmem:[#allocation2 + $0x1a0] sm:$0xff] }
 0x290   : > { %2228 = vrot.lane.b32.xlu0 %v3720_v12, %s3050_s26  ;;  %2037 = vrot.lane.b32.xlu1 %v3730_v16, %s3049_s25 }
 0x291   : > { %v1641_v55 = vpop.permute.xlu0 %1640  ;;  %v1450_v42 = vpop.permute.xlu1 %1449 }
 0x292   : > { %1715 = vst.msk [vmem:[#allocation3 + $0xb0] sm:$0xff] %vm1692_vm9, %v1641_v55 }
 0x293   : > { %1523 = vst.msk [vmem:[#allocation3 + $0xb8] sm:$0xff] %vm1499_vm8, %v1450_v42 }
 0x294   : > { %2196 = vrot.lane.b32.xlu0 %v2122_v41, %s3050_s26  ;;  %2005 = vrot.lane.b32.xlu1 %v1930_v23, %s3049_s25 }
 0x295   : > { %v1609_v53 = vpop.permute.xlu0 %1608  ;;  %v1418_v49 = vpop.permute.xlu1 %1417 }
 0x296   : > { %1699 = vst.msk [vmem:[#allocation3 + $0x30] sm:$0xff] %vm1692_vm9, %v1609_v53  ;;  %v1933_v53 = vld [vmem:[#allocation2 + $0xd9] sm:$0xff] }
 0x297   : > { %1507 = vst.msk [vmem:[#allocation3 + $0x38] sm:$0xff] %vm1499_vm8, %v1418_v49  ;;  %v1741_v49 = vld [vmem:[#allocation2 + $0xe0] sm:$0xff] }
 0x298   : > { %1266 = vrot.lane.b32.xlu0 %v3535_v37, %s3048_s23  ;;  %2230 = vrot.lane.b32.xlu1 %v3740_v21, %s3050_s26 }
 0x299   : > { %v1835_v62 = vpop.permute.xlu0 %1834  ;;  %v1643_v61 = vpop.permute.xlu1 %1642 }
 0x29a   : > { %1909 = vst.msk [vmem:[#allocation3 + $0xb0] sm:$0xff] %vm1886_vm10, %v1835_v62  ;;  %v2142_v62 = vld [vmem:[#allocation2 + $0x19a] sm:$0xff] }
 0x29b   : > { %1716 = vst.msk [vmem:[#allocation3 + $0xb8] sm:$0xff] %vm1692_vm9, %v1643_v61  ;;  %v1950_v61 = vld [vmem:[#allocation2 + $0x1a1] sm:$0xff] }
 0x29c   : > { %1459 = vrot.lane.b32.xlu0 %v3711_v8, %s3046_s16  ;;  %2198 = vrot.lane.b32.xlu1 %v2123_v24, %s3050_s26 }
 0x29d   : > { %v1803_v25 = vpop.permute.xlu0 %1802  ;;  %v1611_v5 = vpop.permute.xlu1 %1610 }
 0x29e   : > { %1893 = vst.msk [vmem:[#allocation3 + $0x30] sm:$0xff] %vm1886_vm10, %v1803_v25 }
 0x29f   : > { %1700 = vst.msk [vmem:[#allocation3 + $0x38] sm:$0xff] %vm1692_vm9, %v1611_v5 }
 0x2a0   : > { %1427 = vrot.lane.b32.xlu0 %v1929_v14, %s3046_s16  ;;  %1268 = vrot.lane.b32.xlu1 %v3542_v56, %s3048_s23  ;;  %v1754_v56 = vld [vmem:[#allocation2 + $0x180] sm:$0xff] }
 0x2a1   : > { %v2028_v37 = vpop.permute.xlu0 %2027  ;;  %v1837_v45 = vpop.permute.xlu1 %1836 }
 0x2a2   : > { %2102 = vst.msk [vmem:[#allocation3 + $0xb0] sm:$0xff] %vm2079_vm11, %v2028_v37 }
 0x2a3   : > { %1910 = vst.msk [vmem:[#allocation3 + $0xb8] sm:$0xff] %vm1886_vm10, %v1837_v45 }
 0x2a4   : > { %1652 = vrot.lane.b32.xlu0 %v3720_v12, %s3047_s17  ;;  %1461 = vrot.lane.b32.xlu1 %v3730_v16, %s3046_s16 }
 0x2a5   : > { %v1996_v8 = vpop.permute.xlu0 %1995  ;;  %v1805_v27 = vpop.permute.xlu1 %1804 }
 0x2a6   : > { %2086 = vst.msk [vmem:[#allocation3 + $0x30] sm:$0xff] %vm2079_vm11, %v1996_v8 }
 0x2a7   : > { %1894 = vst.msk [vmem:[#allocation3 + $0x38] sm:$0xff] %vm1886_vm10, %v1805_v27 }
 0x2a8   : > { %1620 = vrot.lane.b32.xlu0 %v2122_v41, %s3047_s17  ;;  %1429 = vrot.lane.b32.xlu1 %v1930_v23, %s3046_s16 }
 0x2a9   : > { %v2221_v29 = vpop.permute.xlu0 %2220  ;;  %v2030_v31 = vpop.permute.xlu1 %2029 }
 0x2aa   : > { %2295 = vst.msk [vmem:[#allocation3 + $0xb0] sm:$0xff] %vm2272_vm12, %v2221_v29 }
 0x2ab   : > { %2103 = vst.msk [vmem:[#allocation3 + $0xb8] sm:$0xff] %vm2079_vm11, %v2030_v31  ;;  %v2126_v31 = vld [vmem:[#allocation2 + $0xda] sm:$0xff] }
 0x2ac   : > { %1846 = vrot.lane.b32.xlu0 %v1754_v56, %s3051_s30  ;;  %1654 = vrot.lane.b32.xlu1 %v3740_v21, %s3047_s17 }
 0x2ad   : > { %v2189_v12 = vpop.permute.xlu0 %2188  ;;  %v1998_v16 = vpop.permute.xlu1 %1997 }
 0x2ae   : > { %2279 = vst.msk [vmem:[#allocation3 + $0x30] sm:$0xff] %vm2272_vm12, %v2189_v12  ;;  %v1934_v12 = vld [vmem:[#allocation2 + $0xe1] sm:$0xff] }
 0x2af   : > { %2087 = vst.msk [vmem:[#allocation3 + $0x38] sm:$0xff] %vm2079_vm11, %v1998_v16 }
 0x2b0   : > { %1814 = vrot.lane.b32.xlu0 %v1738_v32, %s3051_s30  ;;  %1622 = vrot.lane.b32.xlu1 %v2123_v24, %s3047_s17  ;;  %v2143_v32 = vld [vmem:[#allocation2 + $0x1a2] sm:$0xff] }
 0x2b1   : > { %v1259_v33 = vpop.permute.xlu0 %1258  ;;  %v2223_v34 = vpop.permute.xlu1 %2222  ;;  %v2331_v43 = vld [vmem:[#allocation3 + $0xb0] sm:$0xff] }
 0x2b2   : > { %1331 = vst.msk [vmem:[#allocation3 + $0xc0] sm:$0xff] %vm1306_vm7, %v1259_v33  ;;  %v4059_v33 = vld [vmem:[%s4237_s3 + $0x8] sm:$0xff] }
 0x2b3   : > { %2296 = vst.msk [vmem:[#allocation3 + $0xb8] sm:$0xff] %vm2272_vm12, %v2223_v34  ;;  %2806 = vmatprep.mubr.msk.f32.mxu1 %vm2365_vm13, %v4059_v33 }
 0x2b4   : > { %2039 = vrot.lane.b32.xlu0 %v1947_v54, %s3049_s25  ;;  %1848 = vrot.lane.b32.xlu1 %v1755_v44, %s3051_s30 }
 0x2b5   : > { %v1452_v21 = vpop.permute.xlu0 %1451  ;;  %v2191_v18 = vpop.permute.xlu1 %2190  ;;  %v2315_v19 = vld [vmem:[#allocation3 + $0x30] sm:$0xff] }
 0x2b6   : > { %1524 = vst.msk [vmem:[#allocation3 + $0xc0] sm:$0xff] %vm1499_vm8, %v1452_v21 }
 0x2b7   : > { %2280 = vst.msk [vmem:[#allocation3 + $0x38] sm:$0xff] %vm2272_vm12, %v2191_v18  ;;  %v2127_v18 = vld [vmem:[#allocation2 + $0xe2] sm:$0xff] }
 0x2b8   : > { %2007 = vrot.lane.b32.xlu0 %v1931_v36, %s3049_s25  ;;  %1816 = vrot.lane.b32.xlu1 %v1739_v38, %s3051_s30 }
 0x2b9   : > { %v1420_v40 = vpop.permute.xlu0 %1419  ;;  %v1261_v30 = vpop.permute.xlu1 %1260 }
 0x2ba   : > { %v2332_v46 = vld [vmem:[#allocation3 + $0xb8] sm:$0xff]  ;;  %1508 = vst.msk [vmem:[#allocation3 + $0x40] sm:$0xff] %vm1499_vm8, %v1420_v40  ;;  %v4071_v40 = vld [vmem:[%s4237_s3] sm:$0xff] }
 0x2bb   : > { %1332 = vst.msk [vmem:[#allocation3 + $0xc8] sm:$0xff] %vm1306_vm7, %v1261_v30  ;;  %v2880_v50 = vpack.c.bf16 %v2332_v46, %v2331_v43  ;;  %2804 = vmatprep.mubr.msk.f32.mxu0 %vm2365_vm13, %v4071_v40 }
 0x2bc   : > { %2232 = vrot.lane.b32.xlu0 %v2140_v47, %s3050_s26  ;;  %2041 = vrot.lane.b32.xlu1 %v1948_v48, %s3049_s25 }
 0x2bd   : > { %2882 = vmatprep.subr.msk.bf16.mxu0 %vm3808_vm14, %v2880_v50  ;;  %2913 = vmatprep.subr.msk.bf16.mxu1 %vm3808_vm14, %v2880_v50  ;;  %v1645_v57 = vpop.permute.xlu0 %1644  ;;  %v1454_v35 = vpop.permute.xlu1 %1453  ;;  %v2341_v50 = vld [vmem:[%s4238_s4] sm:$0xff] }
 0x2be   : > { %v2316_v51 = vld [vmem:[#allocation3 + $0x38] sm:$0xff]  ;;  %1717 = vst.msk [vmem:[#allocation3 + $0xc0] sm:$0xff] %vm1692_vm9, %v1645_v57  ;;  %v3052_v57 = vmov 0  }
 0x2bf   : > { %1525 = vst.msk [vmem:[#allocation3 + $0xc8] sm:$0xff] %vm1499_vm8, %v1454_v35  ;;  %v2883_v60 = vpack.c.bf16 %v2316_v51, %v2315_v19  ;;  %2977 = vset.pattern.permute.xlu1 %v3052_v57  ;;  %2976 = vset.pattern.permute.xlu0 %v3052_v57  ;;  %v2343_v51 = vld [vmem:[%s4238_s4 + $0x10] sm:$0xff] }
 0x2c0   : > { %2200 = vrot.lane.b32.xlu0 %v2124_v28, %s3050_s26  ;;  %2009 = vrot.lane.b32.xlu1 %v1932_v52, %s3049_s25 }
 0x2c1   : > { %2885 = vmatpush3.bf16.xpose.msk.msra.mxu0 %vm3808_vm14, %v2883_v60  ;;  %2921 = vmatpush3.bf16.xpose.msk.msra.mxu1 %vm3808_vm14, %v2883_v60  ;;  %v1613_v58 = vpop.permute.xlu0 %1612  ;;  %v1422_v26 = vpop.permute.xlu1 %1421 }
 0x2c2   : > { %1701 = vst.msk [vmem:[#allocation3 + $0x40] sm:$0xff] %vm1692_vm9, %v1613_v58 }
 0x2c3   : > { %1509 = vst.msk [vmem:[#allocation3 + $0x48] sm:$0xff] %vm1499_vm8, %v1422_v26 }
 0x2c4   : > { %1270 = vrot.lane.b32.xlu0 %v1754_v56, %s3048_s23  ;;  %2234 = vrot.lane.b32.xlu1 %v2141_v59, %s3050_s26 }
 0x2c5   : > { %v1839_v39 = vpop.permute.xlu0 %1838  ;;  %v1647_v63 = vpop.permute.xlu1 %1646 }
 0x2c6   : > { %1911 = vst.msk [vmem:[#allocation3 + $0xc0] sm:$0xff] %vm1886_vm10, %v1839_v39 }
 0x2c7   : > { %1718 = vst.msk [vmem:[#allocation3 + $0xc8] sm:$0xff] %vm1692_vm9, %v1647_v63 }
 0x2c8   : > { %1463 = vrot.lane.b32.xlu0 %v1947_v54, %s3046_s16  ;;  %2202 = vrot.lane.b32.xlu1 %v2125_v0, %s3050_s26 }
 0x2c9   : > { %v1807_v1 = vpop.permute.xlu0 %1806  ;;  %v1615_v3 = vpop.permute.xlu1 %1614 }
 0x2ca   : > { %1895 = vst.msk [vmem:[#allocation3 + $0x40] sm:$0xff] %vm1886_vm10, %v1807_v1 }
 0x2cb   : > { %1702 = vst.msk [vmem:[#allocation3 + $0x48] sm:$0xff] %vm1692_vm9, %v1615_v3 }
 0x2cc   : > { %1431 = vrot.lane.b32.xlu0 %v1931_v36, %s3046_s16  ;;  %1272 = vrot.lane.b32.xlu1 %v1755_v44, %s3048_s23  ;;  %s2979_s23 = scalar_lea.vmem %s4188_s14, 1024 }
 0x2cd   : > { %v2032_v9 = vpop.permute.xlu0 %2031  ;;  %v1841_v2 = vpop.permute.xlu1 %1840  ;;  %p2980_p11 = scmp.ne.s32.totalorder %s4188_s14, %s2979_s23 }
 0x2ce   : > { %2104 = vst.msk [vmem:[#allocation3 + $0xc0] sm:$0xff] %vm2079_vm11, %v2032_v9 }
 0x2cf   : > { %1912 = vst.msk [vmem:[#allocation3 + $0xc8] sm:$0xff] %vm1886_vm10, %v1841_v2  ;;  %p2981_p12 = pnand %p2980_p11, %p3123_p5 }
 0x2d0   : > { %1656 = vrot.lane.b32.xlu0 %v2140_v47, %s3047_s17  ;;  %1465 = vrot.lane.b32.xlu1 %v1948_v48, %s3046_s16  ;;  %v2342_v48 = vld [vmem:[%s4238_s4 + $0x8] sm:$0xff] }
 0x2d1   : > { %v2000_v6 = vpop.permute.xlu0 %1999  ;;  %v1809_v7 = vpop.permute.xlu1 %1808  ;;  %p2982_p13 = pneg %p2981_p12 }
 0x2d2   : > { %2088 = vst.msk [vmem:[#allocation3 + $0x40] sm:$0xff] %vm2079_vm11, %v2000_v6 }
 0x2d3   : > { %1896 = vst.msk [vmem:[#allocation3 + $0x48] sm:$0xff] %vm1886_vm10, %v1809_v7 }
 0x2d4   : > { %1624 = vrot.lane.b32.xlu0 %v2124_v28, %s3047_s17  ;;  %1433 = vrot.lane.b32.xlu1 %v1932_v52, %s3046_s16  ;;  %v2344_v28 = vld [vmem:[%s4238_s4 + $0x18] sm:$0xff] }
 0x2d5   : > { %v2225_v22 = vpop.permute.xlu0 %2224  ;;  %v2034_v15 = vpop.permute.xlu1 %2033 }
 0x2d6   : > { %2297 = vst.msk [vmem:[#allocation3 + $0xc0] sm:$0xff] %vm2272_vm12, %v2225_v22 }
 0x2d7   : > { %2105 = vst.msk [vmem:[#allocation3 + $0xc8] sm:$0xff] %vm2079_vm11, %v2034_v15 }
 0x2d8   : > { %1850 = vrot.lane.b32.xlu0 %v1756_v10, %s3051_s30  ;;  %1658 = vrot.lane.b32.xlu1 %v2141_v59, %s3047_s17 }
 0x2da   : > { %v2193_v13 = vpop.permute.xlu0 %2192  ;;  %v2002_v14 = vpop.permute.xlu1 %2001 }
 0x2db   : > { %2281 = vst.msk [vmem:[#allocation3 + $0x40] sm:$0xff] %vm2272_vm12, %v2193_v13 }
 0x2dc   : > { %2089 = vst.msk [vmem:[#allocation3 + $0x48] sm:$0xff] %vm2079_vm11, %v2002_v14  ;;  %1818 = vrot.lane.b32.xlu0 %v1740_v4, %s3051_s30  ;;  %1626 = vrot.lane.b32.xlu1 %v2125_v0, %s3047_s17  ;;  %s4186_s17 = scalar_lea.hbm %s4239_s5, %s2738_s12 }
 0x2dd   : > { %v2333_v5 = vld [vmem:[#allocation3 + $0xc0] sm:$0xff] }
 0x2de   : > { %v1263_v55 = vpop.permute.xlu0 %1262  ;;  %v2227_v42 = vpop.permute.xlu1 %2226 }
 0x2df   : > { %1333 = vst.msk [vmem:[#allocation3 + $0xd0] sm:$0xff] %vm1306_vm7, %v1263_v55 }
 0x2e0   : > { %2298 = vst.msk [vmem:[#allocation3 + $0xc8] sm:$0xff] %vm2272_vm12, %v2227_v42  ;;  %2043 = vrot.lane.b32.xlu0 %v1949_v17, %s3049_s25  ;;  %1852 = vrot.lane.b32.xlu1 %v1757_v20, %s3051_s30 }
 0x2e2   : > { %v1456_v41 = vpop.permute.xlu0 %1455  ;;  %v2195_v23 = vpop.permute.xlu1 %2194  ;;  %v2317_v56 = vld [vmem:[#allocation3 + $0x40] sm:$0xff] }
 0x2e3   : > { %1526 = vst.msk [vmem:[#allocation3 + $0xd0] sm:$0xff] %vm1499_vm8, %v1456_v41 }
 0x2e4   : > { %2282 = vst.msk [vmem:[#allocation3 + $0x48] sm:$0xff] %vm2272_vm12, %v2195_v23  ;;  %2011 = vrot.lane.b32.xlu0 %v1933_v53, %s3049_s25  ;;  %1820 = vrot.lane.b32.xlu1 %v1741_v49, %s3051_s30 }
 0x2e6   : > { %v1424_v24 = vpop.permute.xlu0 %1423  ;;  %v1265_v25 = vpop.permute.xlu1 %1264 }
 0x2e7   : > { %v2334_v37 = vld [vmem:[#allocation3 + $0xc8] sm:$0xff]  ;;  %1510 = vst.msk [vmem:[#allocation3 + $0x50] sm:$0xff] %vm1499_vm8, %v1424_v24 }
 0x2e8   : > { %1334 = vst.msk [vmem:[#allocation3 + $0xd8] sm:$0xff] %vm1306_vm7, %v1265_v25  ;;  %v2886_v45 = vpack.c.bf16 %v2334_v37, %v2333_v5  ;;  %2236 = vrot.lane.b32.xlu0 %v2142_v62, %s3050_s26  ;;  %2045 = vrot.lane.b32.xlu1 %v1950_v61, %s3049_s25 }
 0x2ea   : > { %2888 = vmatprep.subr.msk.bf16.mxu0 %vm3808_vm14, %v2886_v45  ;;  %2914 = vmatprep.subr.msk.bf16.mxu1 %vm3808_vm14, %v2886_v45  ;;  %v1649_v8 = vpop.permute.xlu0 %1648  ;;  %v1458_v27 = vpop.permute.xlu1 %1457 }
 0x2eb   : > { %v2318_v29 = vld [vmem:[#allocation3 + $0x48] sm:$0xff]  ;;  %1719 = vst.msk [vmem:[#allocation3 + $0xd0] sm:$0xff] %vm1692_vm9, %v1649_v8 }
 0x2ec   : > { %1527 = vst.msk [vmem:[#allocation3 + $0xd8] sm:$0xff] %vm1499_vm8, %v1458_v27  ;;  %v2889_v16 = vpack.c.bf16 %v2318_v29, %v2317_v56  ;;  %2204 = vrot.lane.b32.xlu0 %v2126_v31, %s3050_s26  ;;  %2013 = vrot.lane.b32.xlu1 %v1934_v12, %s3049_s25  ;;  %s3053_s25 = smov [#allocation4]  }
 0x2ee   : > { %2891 = vmatpush3.bf16.xpose.msk.msra.mxu0 %vm3808_vm14, %v2889_v16  ;;  %2922 = vmatpush3.bf16.xpose.msk.msra.mxu1 %vm3808_vm14, %v2889_v16  ;;  %v1617_v54 = vpop.permute.xlu0 %1616  ;;  %v1426_v44 = vpop.permute.xlu1 %1425 }
 0x2ef   : > { %1703 = vst.msk [vmem:[#allocation3 + $0x50] sm:$0xff] %vm1692_vm9, %v1617_v54 }
 0x2f0   : > { %1511 = vst.msk [vmem:[#allocation3 + $0x58] sm:$0xff] %vm1499_vm8, %v1426_v44  ;;  %2238 = vrot.lane.b32.xlu1 %v2143_v32, %s3050_s26  ;;  %2347 = vperm.xlu0 %2976, %v2341_v50  }
 0x2f2   : > { %v1843_v34 = vpop.permute.xlu0 %1842  ;;  %v1651_v21 = vpop.permute.xlu1 %1650 }
 0x2f3   : > { %1913 = vst.msk [vmem:[#allocation3 + $0xd0] sm:$0xff] %vm1886_vm10, %v1843_v34 }
 0x2f4   : > { %1720 = vst.msk [vmem:[#allocation3 + $0xd8] sm:$0xff] %vm1692_vm9, %v1651_v21  ;;  %2206 = vrot.lane.b32.xlu1 %v2127_v18, %s3050_s26  ;;  %2362 = vperm.xlu0 %2976, %v2344_v28   ;;  %s2983_s26 = sshll.u32 %s3053_s25, 4  ;;  %s2984_s26 = int_to_ptr.vmem [resolvable:$false] %s2983_s26 }
 0x2f5   : > { %s2985_s30 = scalar_lea.vmem %s2984_s26, 2048  ;;  %p2986_p0 = scmp.lt.s32.totalorder %s4188_s14, %s2984_s26 }
 0x2f6   : > { %v1811_v36 = vpop.permute.xlu0 %1810  ;;  %v1619_v38 = vpop.permute.xlu1 %1618  ;;  %p2987_p1 = scmp.lt.s32.totalorder %s2985_s30, %s2979_s23 }
 0x2f7   : > { %1897 = vst.msk [vmem:[#allocation3 + $0x50] sm:$0xff] %vm1886_vm10, %v1811_v36 }
 0x2f8   : > { %1704 = vst.msk [vmem:[#allocation3 + $0x58] sm:$0xff] %vm1692_vm9, %v1619_v38  ;;  %2352 = vperm.xlu1 %2977, %v2342_v48   ;;  %p2988_p2 = por %p2987_p1, %p2986_p0 }
 0x2fa   : > { %v2036_v30 = vpop.permute.xlu0 %2035  ;;  %v1845_v43 = vpop.permute.xlu1 %1844  ;;  %p2989_p3 = pnand %p2988_p2, %p2982_p13 }
 0x2fb   : > { %2106 = vst.msk [vmem:[#allocation3 + $0xd0] sm:$0xff] %vm2079_vm11, %v2036_v30 }
 0x2fc   : > { %1914 = vst.msk [vmem:[#allocation3 + $0xd8] sm:$0xff] %vm1886_vm10, %v1845_v43  ;;  %2357 = vperm.xlu1 %2977, %v2343_v51  }
 0x2fe   : > { %v2004_v46 = vpop.permute.xlu0 %2003  ;;  %v1813_v47 = vpop.permute.xlu1 %1812 }
 0x2ff   : > { %2090 = vst.msk [vmem:[#allocation3 + $0x50] sm:$0xff] %vm2079_vm11, %v2004_v46 }
 0x300   : > { %1898 = vst.msk [vmem:[#allocation3 + $0x58] sm:$0xff] %vm1886_vm10, %v1813_v47 }
 0x302   : > { %v2229_v35 = vpop.permute.xlu0 %2228  ;;  %v2038_v19 = vpop.permute.xlu1 %2037 }
 0x303   : > { %2299 = vst.msk [vmem:[#allocation3 + $0xd0] sm:$0xff] %vm2272_vm12, %v2229_v35 }
 0x304   : > { %2107 = vst.msk [vmem:[#allocation3 + $0xd8] sm:$0xff] %vm2079_vm11, %v2038_v19 }
 0x306   : > { %v2197_v52 = vpop.permute.xlu0 %2196  ;;  %v2006_v60 = vpop.permute.xlu1 %2005 }
 0x307   : > { %2283 = vst.msk [vmem:[#allocation3 + $0x50] sm:$0xff] %vm2272_vm12, %v2197_v52 }
 0x308   : > { %2091 = vst.msk [vmem:[#allocation3 + $0x58] sm:$0xff] %vm2079_vm11, %v2006_v60 }
 0x30a   : > { %v1267_v58 = vpop.permute.xlu0 %1266  ;;  %v2231_v26 = vpop.permute.xlu1 %2230  ;;  %v2335_v1 = vld [vmem:[#allocation3 + $0xd0] sm:$0xff] }
 0x30b   : > { %1335 = vst.msk [vmem:[#allocation3 + $0xe0] sm:$0xff] %vm1306_vm7, %v1267_v58 }
 0x30c   : > { %2300 = vst.msk [vmem:[#allocation3 + $0xd8] sm:$0xff] %vm2272_vm12, %v2231_v26 }
 0x30e   : > { %v1460_v59 = vpop.permute.xlu0 %1459  ;;  %v2199_v39 = vpop.permute.xlu1 %2198  ;;  %v2319_v7 = vld [vmem:[#allocation3 + $0x50] sm:$0xff] }
 0x30f   : > { %1528 = vst.msk [vmem:[#allocation3 + $0xe0] sm:$0xff] %vm1499_vm8, %v1460_v59 }
 0x310   : > { %2284 = vst.msk [vmem:[#allocation3 + $0x58] sm:$0xff] %vm2272_vm12, %v2199_v39  ;;  %v2307_v39 = vld [vmem:[%s4237_s3 + $0x10] sm:$0xff] }
 0x312   : > { %v1428_v63 = vpop.permute.xlu0 %1427  ;;  %v1269_v0 = vpop.permute.xlu1 %1268 }
 0x313   : > { %v2336_v3 = vld [vmem:[#allocation3 + $0xd8] sm:$0xff]  ;;  %1512 = vst.msk [vmem:[#allocation3 + $0x60] sm:$0xff] %vm1499_vm8, %v1428_v63  ;;  %v2308_v63 = vld [vmem:[%s4237_s3 + $0x18] sm:$0xff] }
 0x314   : > { %1336 = vst.msk [vmem:[#allocation3 + $0xe8] sm:$0xff] %vm1306_vm7, %v1269_v0  ;;  %v2892_v9 = vpack.c.bf16 %v2336_v3, %v2335_v1 }
 0x316   : > { %2894 = vmatprep.subr.msk.bf16.mxu0 %vm3808_vm14, %v2892_v9  ;;  %2915 = vmatprep.subr.msk.bf16.mxu1 %vm3808_vm14, %v2892_v9  ;;  %v1653_v2 = vpop.permute.xlu0 %1652  ;;  %v1462_v6 = vpop.permute.xlu1 %1461 }
 0x317   : > { %v2320_v10 = vld [vmem:[#allocation3 + $0x58] sm:$0xff]  ;;  %1721 = vst.msk [vmem:[#allocation3 + $0xe0] sm:$0xff] %vm1692_vm9, %v1653_v2 }
 0x318   : > { %1529 = vst.msk [vmem:[#allocation3 + $0xe8] sm:$0xff] %vm1499_vm8, %v1462_v6  ;;  %v2895_v22 = vpack.c.bf16 %v2320_v10, %v2319_v7 }
 0x31a   : > { %2897 = vmatpush3.bf16.xpose.msk.msra.mxu0 %vm3808_vm14, %v2895_v22  ;;  %2923 = vmatpush3.bf16.xpose.msk.msra.mxu1 %vm3808_vm14, %v2895_v22  ;;  %v1621_v15 = vpop.permute.xlu0 %1620  ;;  %v1430_v13 = vpop.permute.xlu1 %1429 }
 0x31b   : > { %1705 = vst.msk [vmem:[#allocation3 + $0x60] sm:$0xff] %vm1692_vm9, %v1621_v15 }
 0x31c   : > { %1513 = vst.msk [vmem:[#allocation3 + $0x68] sm:$0xff] %vm1499_vm8, %v1430_v13 }
 0x31e   : > { %v1847_v14 = vpop.permute.xlu0 %1846  ;;  %v1655_v4 = vpop.permute.xlu1 %1654 }
 0x31f   : > { %1915 = vst.msk [vmem:[#allocation3 + $0xe0] sm:$0xff] %vm1886_vm10, %v1847_v14 }
 0x320   : > { %1722 = vst.msk [vmem:[#allocation3 + $0xe8] sm:$0xff] %vm1692_vm9, %v1655_v4 }
 0x322   : > { %v1815_v17 = vpop.permute.xlu0 %1814  ;;  %v1623_v20 = vpop.permute.xlu1 %1622 }
 0x323   : > { %1899 = vst.msk [vmem:[#allocation3 + $0x60] sm:$0xff] %vm1886_vm10, %v1815_v17 }
 0x324   : > { %1706 = vst.msk [vmem:[#allocation3 + $0x68] sm:$0xff] %vm1692_vm9, %v1623_v20 }
 0x326   : > { %v2040_v55 = vpop.permute.xlu0 %2039  ;;  %v1849_v42 = vpop.permute.xlu1 %1848 }
 0x327   : > { %2108 = vst.msk [vmem:[#allocation3 + $0xe0] sm:$0xff] %vm2079_vm11, %v2040_v55 }
 0x328   : > { %1916 = vst.msk [vmem:[#allocation3 + $0xe8] sm:$0xff] %vm1886_vm10, %v1849_v42 }
 0x32a   : > { %v2008_v41 = vpop.permute.xlu0 %2007  ;;  %v1817_v23 = vpop.permute.xlu1 %1816 }
 0x32b   : > { %2092 = vst.msk [vmem:[#allocation3 + $0x60] sm:$0xff] %vm2079_vm11, %v2008_v41 }
 0x32c   : > { %1900 = vst.msk [vmem:[#allocation3 + $0x68] sm:$0xff] %vm1886_vm10, %v1817_v23 }
 0x32e   : > { %v2233_v53 = vpop.permute.xlu0 %2232  ;;  %v2042_v49 = vpop.permute.xlu1 %2041 }
 0x32f   : > { %2301 = vst.msk [vmem:[#allocation3 + $0xe0] sm:$0xff] %vm2272_vm12, %v2233_v53 }
 0x330   : > { %2109 = vst.msk [vmem:[#allocation3 + $0xe8] sm:$0xff] %vm2079_vm11, %v2042_v49 }
 0x332   : > { %v2201_v62 = vpop.permute.xlu0 %2200  ;;  %v2010_v61 = vpop.permute.xlu1 %2009 }
 0x333   : > { %2285 = vst.msk [vmem:[#allocation3 + $0x60] sm:$0xff] %vm2272_vm12, %v2201_v62 }
 0x334   : > { %2093 = vst.msk [vmem:[#allocation3 + $0x68] sm:$0xff] %vm2079_vm11, %v2010_v61 }
 0x336   : > { %v1271_v24 = vpop.permute.xlu0 %1270  ;;  %v2235_v25 = vpop.permute.xlu1 %2234  ;;  %v2337_v27 = vld [vmem:[#allocation3 + $0xe0] sm:$0xff] }
 0x337   : > { %1337 = vst.msk [vmem:[#allocation3 + $0xf0] sm:$0xff] %vm1306_vm7, %v1271_v24 }
 0x338   : > { %2302 = vst.msk [vmem:[#allocation3 + $0xe8] sm:$0xff] %vm2272_vm12, %v2235_v25 }
 0x33a   : > { %v1464_v5 = vpop.permute.xlu0 %1463  ;;  %v2203_v37 = vpop.permute.xlu1 %2202  ;;  %v2321_v16 = vld [vmem:[#allocation3 + $0x60] sm:$0xff] }
 0x33b   : > { %1530 = vst.msk [vmem:[#allocation3 + $0xf0] sm:$0xff] %vm1499_vm8, %v1464_v5 }
 0x33c   : > { %2286 = vst.msk [vmem:[#allocation3 + $0x68] sm:$0xff] %vm2272_vm12, %v2203_v37 }
 0x33e   : > { %v1432_v45 = vpop.permute.xlu0 %1431  ;;  %v1273_v8 = vpop.permute.xlu1 %1272 }
 0x33f   : > { %v2338_v56 = vld [vmem:[#allocation3 + $0xe8] sm:$0xff]  ;;  %1514 = vst.msk [vmem:[#allocation3 + $0x70] sm:$0xff] %vm1499_vm8, %v1432_v45 }
 0x340   : > { %1338 = vst.msk [vmem:[#allocation3 + $0xf8] sm:$0xff] %vm1306_vm7, %v1273_v8  ;;  %v2898_v29 = vpack.c.bf16 %v2338_v56, %v2337_v27 }
 0x342   : > { %2900 = vmatprep.subr.msk.bf16.mxu0 %vm3808_vm14, %v2898_v29  ;;  %2916 = vmatprep.subr.msk.bf16.mxu1 %vm3808_vm14, %v2898_v29  ;;  %v1657_v31 = vpop.permute.xlu0 %1656  ;;  %v1466_v12 = vpop.permute.xlu1 %1465 }
 0x343   : > { %v2322_v32 = vld [vmem:[#allocation3 + $0x68] sm:$0xff]  ;;  %1723 = vst.msk [vmem:[#allocation3 + $0xf0] sm:$0xff] %vm1692_vm9, %v1657_v31 }
 0x344   : > { %1531 = vst.msk [vmem:[#allocation3 + $0xf8] sm:$0xff] %vm1499_vm8, %v1466_v12  ;;  %v2901_v54 = vpack.c.bf16 %v2322_v32, %v2321_v16 }
 0x346   : > { %2903 = vmatpush3.bf16.xpose.msk.msra.mxu0 %vm3808_vm14, %v2901_v54  ;;  %2924 = vmatpush3.bf16.xpose.msk.msra.mxu1 %vm3808_vm14, %v2901_v54  ;;  %v1625_v44 = vpop.permute.xlu0 %1624  ;;  %v1434_v34 = vpop.permute.xlu1 %1433 }
 0x347   : > { %1707 = vst.msk [vmem:[#allocation3 + $0x70] sm:$0xff] %vm1692_vm9, %v1625_v44 }
 0x348   : > { %1515 = vst.msk [vmem:[#allocation3 + $0x78] sm:$0xff] %vm1499_vm8, %v1434_v34 }
 0x34a   : > { %v1851_v21 = vpop.permute.xlu0 %1850  ;;  %v1659_v18 = vpop.permute.xlu1 %1658 }
 0x34b   : > { %1917 = vst.msk [vmem:[#allocation3 + $0xf0] sm:$0xff] %vm1886_vm10, %v1851_v21 }
 0x34c   : > { %1724 = vst.msk [vmem:[#allocation3 + $0xf8] sm:$0xff] %vm1692_vm9, %v1659_v18 }
 0x34e   : > { %v1819_v36 = vpop.permute.xlu0 %1818  ;;  %v1627_v38 = vpop.permute.xlu1 %1626 }
 0x34f   : > { %1901 = vst.msk [vmem:[#allocation3 + $0x70] sm:$0xff] %vm1886_vm10, %v1819_v36 }
 0x350   : > { %1708 = vst.msk [vmem:[#allocation3 + $0x78] sm:$0xff] %vm1692_vm9, %v1627_v38 }
 0x352   : > { %v2044_v30 = vpop.permute.xlu0 %2043  ;;  %v1853_v43 = vpop.permute.xlu1 %1852 }
 0x353   : > { %2110 = vst.msk [vmem:[#allocation3 + $0xf0] sm:$0xff] %vm2079_vm11, %v2044_v30 }
 0x354   : > { %1918 = vst.msk [vmem:[#allocation3 + $0xf8] sm:$0xff] %vm1886_vm10, %v1853_v43 }
 0x356   : > { %v2012_v46 = vpop.permute.xlu0 %2011  ;;  %v1821_v47 = vpop.permute.xlu1 %1820 }
 0x357   : > { %2094 = vst.msk [vmem:[#allocation3 + $0x70] sm:$0xff] %vm2079_vm11, %v2012_v46 }
 0x358   : > { %1902 = vst.msk [vmem:[#allocation3 + $0x78] sm:$0xff] %vm1886_vm10, %v1821_v47 }
 0x35a   : > { %v2237_v48 = vpop.permute.xlu0 %2236  ;;  %v2046_v50 = vpop.permute.xlu1 %2045 }
 0x35b   : > { %2303 = vst.msk [vmem:[#allocation3 + $0xf0] sm:$0xff] %vm2272_vm12, %v2237_v48 }
 0x35c   : > { %2111 = vst.msk [vmem:[#allocation3 + $0xf8] sm:$0xff] %vm2079_vm11, %v2046_v50 }
 0x35e   : > { %v2205_v57 = vpop.permute.xlu0 %2204  ;;  %v2014_v35 = vpop.permute.xlu1 %2013 }
 0x35f   : > { %2287 = vst.msk [vmem:[#allocation3 + $0x70] sm:$0xff] %vm2272_vm12, %v2205_v57 }
 0x360   : > { %2095 = vst.msk [vmem:[#allocation3 + $0x78] sm:$0xff] %vm2079_vm11, %v2014_v35 }
 0x362   : > { %v2239_v19 = vpop.permute.xlu1 %2238  ;;  %v2339_v28 = vld [vmem:[#allocation3 + $0xf0] sm:$0xff] }
 0x363   : > { %2304 = vst.msk [vmem:[#allocation3 + $0xf8] sm:$0xff] %vm2272_vm12, %v2239_v19 }
 0x366   : > { %v2207_v51 = vpop.permute.xlu1 %2206  ;;  %v2323_v58 = vld [vmem:[#allocation3 + $0x70] sm:$0xff] }
 0x367   : > { %2288 = vst.msk [vmem:[#allocation3 + $0x78] sm:$0xff] %vm2272_vm12, %v2207_v51 }
 0x36a   : > { %v2340_v52 = vld [vmem:[#allocation3 + $0xf8] sm:$0xff] }
 0x36b   : > { %v2904_v60 = vpack.c.bf16 %v2340_v52, %v2339_v28 }
 0x36d   : > { %2906 = vmatprep.subr.msk.bf16.mxu0 %vm3808_vm14, %v2904_v60  ;;  %2917 = vmatprep.subr.msk.bf16.mxu1 %vm3808_vm14, %v2904_v60 }
 0x36e   : > { %v2324_v26 = vld [vmem:[#allocation3 + $0x78] sm:$0xff] }
 0x36f   : > { %v2907_v59 = vpack.c.bf16 %v2324_v26, %v2323_v58 }
 0x371   : > { %2909 = vmatpush3.bf16.xpose.msk.msra.mxu0 %vm3808_vm14, %v2907_v59  ;;  %2925 = vmatpush3.bf16.xpose.msk.msra.mxu1 %vm3808_vm14, %v2907_v59 }
 0x377   : > { %v2353_v11 = vpop.permute.xlu1 %2352 }
 0x378   : > { %2807 = vmatmul.mubr.msk.f32.vlgmr.msra.gmra.mrb[0].mxu1 %vm2365_vm13, %v4059_v33  ;;  %2805 = vmatmul.mubr.msk.f32.vlgmr.msra.gmra.mrb[32].mxu0 %vm2365_vm13, %v4071_v40  ;;  %v2348_v33 = vpop.permute.xlu0 %2347 }
 0x379   : > { %2808 = vmatprep.mubr.msk.f32.mxu1 %vm2365_vm13, %v2307_v39 }
 0x37b   : > { %v2358_v7 = vpop.permute.xlu1 %2357 }
 0x37c   : > { %2809 = vmatmul.mubr.msk.f32.gmra.mrb[2].mxu1 %vm2365_vm13, %v2307_v39  ;;  %v2363_v41 = vpop.permute.xlu0 %2362 }
 0x37d   : > { %2810 = vmatprep.mubr.msk.f32.mxu1 %vm2365_vm13, %v2308_v63 }
 0x380   : > { %2811 = vmatmul.mubr.msk.f32.gmra.mrb[4].mxu1 %vm2365_vm13, %v2308_v63 }
 0x44b   : > { %v2546_v0 = vpop.f32.mrb[0].mxu1  ;;  %v2540_v1 = vpop.f32.mrb[32].mxu0 }
 0x44c   : > { %v2547_v40 = vadd.f32 %v2546_v0, %v2353_v11  ;;  %v2548_v3 = vpop.f32.mrb[1].mxu1  ;;  %v2541_v9 = vadd.f32 %v2540_v1, %v2348_v33  ;;  %v2542_v2 = vpop.f32.mrb[33].mxu0 }
 0x44d   : > { %v2549_v6 = vadd.f32 %v2548_v3, %v2353_v11  ;;  %v2543_v10 = vadd.f32 %v2542_v2, %v2348_v33 }
 0x44e   : > { %v2565_v22 = vmax.f32 %v2547_v40, 0.0  ;;  %v2563_v15 = vmax.f32 %v2541_v9, 0.0 }
 0x44f   : > { %v2566_v13 = vmax.f32 %v2549_v6, 0.0  ;;  %v2552_v14 = vpop.f32.mrb[2].mxu1  ;;  %v2564_v4 = vmax.f32 %v2543_v10, 0.0 }
 0x450   : > { %2573 = vst [vmem:[%s217_s11 + $0x10] sm:$0xff] %v2565_v22  ;;  %2571 = vst [vmem:[%s217_s11] sm:$0xff] %v2563_v15  ;;  %v2553_v17 = vadd.f32 %v2552_v14, %v2358_v7  ;;  %v2554_v20 = vpop.f32.mrb[3].mxu1 }
 0x451   : > { %2574 = vst [vmem:[%s217_s11 + $0x18] sm:$0xff] %v2566_v13  ;;  %2572 = vst [vmem:[%s217_s11 + $0x8] sm:$0xff] %v2564_v4  ;;  %v2555_v55 = vadd.f32 %v2554_v20, %v2358_v7 }
 0x452   : > { %v2567_v42 = vmax.f32 %v2553_v17, 0.0 }
 0x453   : > { %v2568_v23 = vmax.f32 %v2555_v55, 0.0  ;;  %v2558_v53 = vpop.f32.mrb[4].mxu1 }
 0x454   : > { %2575 = vst [vmem:[%s217_s11 + $0x20] sm:$0xff] %v2567_v42  ;;  %v2559_v49 = vadd.f32 %v2558_v53, %v2363_v41  ;;  %v2560_v62 = vpop.f32.mrb[5].mxu1 }
 0x455   : > { %2576 = vst [vmem:[%s217_s11 + $0x28] sm:$0xff] %v2568_v23  ;;  %v2561_v61 = vadd.f32 %v2560_v62, %v2363_v41 }
 0x456   : > { %v2569_v24 = vmax.f32 %v2559_v49, 0.0 }
 0x457   : > { %v2570_v25 = vmax.f32 %v2561_v61, 0.0 }
 0x458   : > { %2577 = vst [vmem:[%s217_s11 + $0x30] sm:$0xff] %v2569_v24 }
 0x459   : > { %2578 = vst [vmem:[%s217_s11 + $0x38] sm:$0xff] %v2570_v25 }
 0x45a   : > { %2992 = shalt.err (!%p2989_p3)
}
 0x45b   : > { %s2993_s6 = scalar_lea.hbm %s4186_s17, 1024  ;;  %s2997_s9 = scalar_lea.hbm %s4239_s5, 2048 }
 0x45c   : > { %p2994_p4 = scmp.ne.s32.totalorder %s4186_s17, %s2993_s6  ;;  %p2998_p9 = scmp.lt.u32.totalorder %s4186_s17, %s4239_s5 }
 0x45d   : > { %p2999_p10 = scmp.lt.u32.totalorder %s2997_s9, %s2993_s6  ;;  %p3001_p12 = scmp.lt.u32.totalorder %s2993_s6, %s4186_s17 }
 0x45e   : > { %p2995_p7 = pnand %p2994_p4, %p3123_p5 }
 0x45f   : > { %p3000_p11 = por %p2999_p10, %p2998_p9 }
 0x460   : > { %p2996_p8 = pneg %p2995_p7 }
 0x461   : > { %p3002_p13 = por %p3001_p12, %p3000_p11 }
 0x463   : > { %p3003_p0 = pnand %p3002_p13, %p2996_p8 }
 0x465   : > { %3006 = shalt.err (!%p3003_p0)
}
 0x466   : > { %s3054_s12 = smov 256  }
 0x467   : > { %2926 = dma.vmem_to_hbm [thread:$0]  (%p3123_p5), %s4188_s14, 1024, %s4186_s17, %s4192_s22, %s3054_s12, %s3054_s12, %s3045_s13  }
 0x468 PF: > { %p2932_p1 = scmp.ge.s32.totalorder %s3041_s21, 2  ;;  %s2608_s15 = sand.u32 1, %s3029_s18  }
 0x469   : > { %s2609_s16 = scalar_lea.sflag [#allocation5], %s2608_s15 }
 0x46a   : > { %p2929_p2 = pnand %p2932_p1, %p3127_p6 }
 0x46c   : > { %3024 = dma.done.wait (!%p2929_p2), %s2609_s16, 1024  }
 0x46d   : > { %3026 = vsyncadd (!%p2929_p2), %s2609_s16, 4294966272  ;;  %p15_p3 = scmp.ge.s32.totalorder %s3110_s24, 4   ;;  %s4244_s18 = smov %s3033_s19 }
 0x46e   : > { %s4245_s19 = smov %s3037_s20  ;;  %s4246_s20 = smov %s3121_s27 }
 0x46f   : > { %s4247_s21 = smov %s3110_s24  ;;  %17 = sbr.rel (!%p15_p3) target bundleno = 3 (0x3), region = 78 }
 0x476   :  { %2614 = vsyncpa [#allocation5], 1 }
 0x477   :  { %2616 = vsyncpa [#allocation5 + $0x1], 1 }

</bundles_post_ra>
